<compile_context>
chip_gen: v5e
topology: v5e:2x2
jax: 0.10.0
libtpu: 0.0.40
codegen_flags: <defaults>
</compile_context>

<pallas_src>
import functools
import math

import jax
import jax.numpy as jnp
from jax import lax
from jax.experimental import pallas as pl
from jax.experimental.pallas import tpu as pltpu

# ---------------- model hyper-params (small, consistent with the module) ----------------
SIZE = 16                       # generator output resolution
STYLE_DIM = 512                 # fixed by channels dict / transformer dim in the module
TEXT_DIM = 256
N_MLP = 2
CHANNEL_MULT = 2
CHANNELS = {4: 512, 8: 512, 16: 512}
LOG_SIZE = int(math.log2(SIZE))
NUM_FOLD = 2
NUM_STAGE = LOG_SIZE // NUM_FOLD - 1          # = 1 for size 16
N_LATENT = NUM_FOLD * NUM_STAGE * 2 + 1       # = 5

_VMEM_LIMIT = 48 * 1024 * 1024                # safe on v7x (64 MiB physical), fine on v5e/v6e
_SQRT2 = math.sqrt(2.0)


def _lrelu(x):
    # fused_leaky_relu: lrelu(0.2) * sqrt(2) (bias already added by the caller)
    return jnp.where(x >= 0.0, x, 0.2 * x) * _SQRT2


# ======================= Pallas kernel 1: equalized linear =======================
def _linear_kernel(x_ref, w_ref, b_ref, o_ref, *, activation, nk):
    k = pl.program_id(0)

    @pl.when(k == 0)
    def _():
        o_ref[...] = jnp.zeros_like(o_ref)

    # bf16 x bf16 -> f32 accumulation directly into the resident output block
    o_ref[...] += jnp.dot(x_ref[...], w_ref[...], preferred_element_type=jnp.float32)

    @pl.when(k == nk - 1)
    def _():
        y = o_ref[...] + b_ref[...]
        if activation:
            y = _lrelu(y)
        o_ref[...] = y


def equal_linear(x, w, b, *, activation=False, tk_max=4096):
    """x:(M,K)  w:(K,N) already equal-lr scaled  b:(N,).  Returns f32 (M,N)."""
    M, K = x.shape
    N = w.shape[1]
    Mp = max(M, 8)                                 # avoid sub-8-sublane masked stores
    if Mp != M:
        x = jnp.pad(x, ((0, Mp - M), (0, 0)))
    tk = K if K <= tk_max else tk_max
    assert K % tk == 0
    nk = K // tk
    out = pl.pallas_call(
        functools.partial(_linear_kernel, activation=activation, nk=nk),
        grid=(nk,),
        in_specs=[
            pl.BlockSpec((Mp, tk), lambda k: (0, k)),
            pl.BlockSpec((tk, N), lambda k: (k, 0)),
            pl.BlockSpec((1, N), lambda k: (0, 0)),
        ],
        out_specs=pl.BlockSpec((Mp, N), lambda k: (0, 0)),
        out_shape=jax.ShapeDtypeStruct((Mp, N), jnp.float32),
        compiler_params=pltpu.CompilerParams(
            dimension_semantics=("arbitrary",), vmem_limit_bytes=_VMEM_LIMIT),
    )(x.astype(jnp.bfloat16), w.astype(jnp.bfloat16),
      b.reshape(1, N).astype(jnp.float32))
    return out[:M] if Mp != M else out


# ============== Pallas kernel 2: PixelNorm + 2x EqualLinear (fused MLP) ==============
def _mlp2_kernel(x_ref, w1_ref, b1_ref, w2_ref, b2_ref, o_ref, *, prenorm):
    x = x_ref[...]
    if prenorm:  # PixelNorm over the feature axis
        x = x * lax.rsqrt(jnp.mean(x * x, axis=-1, keepdims=True) + 1e-8)
    h = jnp.dot(x.astype(jnp.bfloat16), w1_ref[...],
                preferred_element_type=jnp.float32) + b1_ref[...]
    h = _lrelu(h)
    y = jnp.dot(h.astype(jnp.bfloat16), w2_ref[...],
                preferred_element_type=jnp.float32) + b2_ref[...]
    o_ref[...] = _lrelu(y)


def equal_mlp2(x, w1, b1, w2, b2, *, prenorm):
    """Fused PixelNorm(opt) -> EqualLinear+fused_lrelu -> EqualLinear+fused_lrelu."""
    M, K = x.shape
    Hd = w1.shape[1]
    N = w2.shape[1]
    Mp = max(M, 8)
    if Mp != M:
        x = jnp.pad(x, ((0, Mp - M), (0, 0)))
    out = pl.pallas_call(
        functools.partial(_mlp2_kernel, prenorm=prenorm),
        grid=(1,),
        in_specs=[
            pl.BlockSpec((Mp, K), lambda i: (0, 0)),
            pl.BlockSpec((K, Hd), lambda i: (0, 0)),
            pl.BlockSpec((1, Hd), lambda i: (0, 0)),
            pl.BlockSpec((Hd, N), lambda i: (0, 0)),
            pl.BlockSpec((1, N), lambda i: (0, 0)),
        ],
        out_specs=pl.BlockSpec((Mp, N), lambda i: (0, 0)),
        out_shape=jax.ShapeDtypeStruct((Mp, N), jnp.float32),
        compiler_params=pltpu.CompilerParams(
            dimension_semantics=("arbitrary",), vmem_limit_bytes=_VMEM_LIMIT),
    )(x.astype(jnp.float32), w1.astype(jnp.bfloat16),
      b1.reshape(1, Hd).astype(jnp.float32),
      w2.astype(jnp.bfloat16), b2.reshape(1, N).astype(jnp.float32))
    return out[:M] if Mp != M else out


# ======================= Pallas kernel 3: cross attention =======================
def _attn_kernel(q_ref, k_ref, v_ref, o_ref, a_ref, *, dim):
    q = q_ref[0]            # (L, D) bf16
    k = k_ref[0]            # (S, D) bf16
    v = v_ref[0]            # (S, D) bf16
    s = lax.dot_general(q, k, dimension_numbers=(((1,), (1,)), ((), ())),
                        preferred_element_type=jnp.float32) * (1.0 / math.sqrt(dim))
    s = s - jnp.max(s, axis=-1, keepdims=True)
    p = jnp.exp(s)
    p = p * pl.reciprocal(jnp.sum(p, axis=-1, keepdims=True), approx=True)
    o_ref[0] = jnp.dot(p.astype(jnp.bfloat16), v, preferred_element_type=jnp.float32)
    a_ref[0] = p


def cross_attention(q, k, v):
    B, L, D = q.shape
    S = k.shape[1]
    out, att = pl.pallas_call(
        functools.partial(_attn_kernel, dim=D),
        grid=(B,),          # "parallel" so v7x's two TensorCores each take one batch element
        in_specs=[
            pl.BlockSpec((1, L, D), lambda b: (b, 0, 0)),
            pl.BlockSpec((1, S, D), lambda b: (b, 0, 0)),
            pl.BlockSpec((1, S, D), lambda b: (b, 0, 0)),
        ],
        out_specs=(
            pl.BlockSpec((1, L, D), lambda b: (b, 0, 0)),
            pl.BlockSpec((1, L, S), lambda b: (b, 0, 0)),
        ),
        out_shape=(
            jax.ShapeDtypeStruct((B, L, D), jnp.float32),
            jax.ShapeDtypeStruct((B, L, S), jnp.float32),
        ),
        compiler_params=pltpu.CompilerParams(
            dimension_semantics=("parallel",), vmem_limit_bytes=_VMEM_LIMIT),
    )(q.astype(jnp.bfloat16), k.astype(jnp.bfloat16), v.astype(jnp.bfloat16))
    return out, att


# ======= Pallas kernel 4: StyledConv (modulated 3x3 conv as im2col matmul) ± ToRGB =======
def _modconv_kernel(cols_ref, w_ref, d_ref, n_ref, b_ref, o_ref):
    acc = jnp.dot(cols_ref[0], w_ref[...], preferred_element_type=jnp.float32)
    y = acc * d_ref[...] + n_ref[0] + b_ref[...]
    o_ref[0] = _lrelu(y)


def _modconv_rgb_kernel(cols_ref, w_ref, d_ref, n_ref, b_ref,
                        srgb_ref, wrgb_ref, brgb_ref, o_ref, rgb_ref):
    acc = jnp.dot(cols_ref[0], w_ref[...], preferred_element_type=jnp.float32)
    y = _lrelu(acc * d_ref[...] + n_ref[0] + b_ref[...])
    o_ref[0] = y
    # fused ToRGB: modulated 1x1 conv (no demod), lane-padded to 128 output columns
    xr = (y * srgb_ref[...]).astype(jnp.bfloat16)
    rgb_ref[0] = jnp.dot(xr, wrgb_ref[...],
                         preferred_element_type=jnp.float32) + brgb_ref[...]


def styled_conv3x3(x, style_vec, cp, noise, rgb_params=None, rgb_style=None):
    """x:(B,H,W,Cin) NHWC, style_vec:(B,style_dim), cp: conv params, noise:(B,H,W,1).
    If rgb_params is given, also emits the fused ToRGB output."""
    B, H, W, Cin = x.shape
    Cout = cp["w"].shape[-1]
    HW = H * W
    K9 = 9 * Cin

    # modulation / demodulation
    s = equal_linear(style_vec, cp["mod_w"], cp["mod_b"])                  # (B, Cin)
    wsq = jnp.sum(cp["w"] * cp["w"], axis=(0, 1))                          # (Cin, Cout)
    demod = lax.rsqrt(jnp.dot(s * s, wsq) + 1e-8)                          # (B, Cout)

    # im2col of the modulated, padded input (plain-JAX layout plumbing, then bf16 for the MXU)
    xpad = jnp.pad(x, ((0, 0), (1, 1), (1, 1), (0, 0)))
    xm = xpad * s[:, None, None, :]
    cols = jnp.concatenate(
        [xm[:, ky:ky + H, kx:kx + W, :] for ky in range(3) for kx in range(3)],
        axis=-1).reshape(B, HW, K9).astype(jnp.bfloat16)
    w_flat = cp["w"].reshape(K9, Cout).astype(jnp.bfloat16)
    noise_t = (noise * cp["strength"]).reshape(B, HW, 1).astype(jnp.float32)
    bias = cp["bias"].reshape(1, Cout).astype(jnp.float32)

    cparams = pltpu.CompilerParams(dimension_semantics=("parallel",),
                                   vmem_limit_bytes=_VMEM_LIMIT)
    common_in = [
        pl.BlockSpec((1, HW, K9), lambda b: (b, 0, 0)),
        pl.BlockSpec((K9, Cout), lambda b: (0, 0)),
        pl.BlockSpec((1, Cout), lambda b: (b, 0)),
        pl.BlockSpec((1, HW, 1), lambda b: (b, 0, 0)),
        pl.BlockSpec((1, Cout), lambda b: (0, 0)),
    ]

    if rgb_params is None:
        out = pl.pallas_call(
            _modconv_kernel,
            grid=(B,),
            in_specs=common_in,
            out_specs=pl.BlockSpec((1, HW, Cout), lambda b: (b, 0, 0)),
            out_shape=jax.ShapeDtypeStruct((B, HW, Cout), jnp.float32),
            compiler_params=cparams,
        )(cols, w_flat, demod, noise_t, bias)
        return out.reshape(B, H, W, Cout)

    s_rgb = equal_linear(rgb_style, rgb_params["mod_w"], rgb_params["mod_b"])   # (B, Cout)
    w_rgb = jnp.zeros((Cout, 128), jnp.float32).at[:, :3].set(rgb_params["w"])
    b_rgb = jnp.zeros((1, 128), jnp.float32).at[0, :3].set(rgb_params["bias"])
    out, rgb = pl.pallas_call(
        _modconv_rgb_kernel,
        grid=(B,),
        in_specs=common_in + [
            pl.BlockSpec((1, Cout), lambda b: (b, 0)),
            pl.BlockSpec((Cout, 128), lambda b: (0, 0)),
            pl.BlockSpec((1, 128), lambda b: (0, 0)),
        ],
        out_specs=(
            pl.BlockSpec((1, HW, Cout), lambda b: (b, 0, 0)),
            pl.BlockSpec((1, HW, 128), lambda b: (b, 0, 0)),
        ),
        out_shape=(
            jax.ShapeDtypeStruct((B, HW, Cout), jnp.float32),
            jax.ShapeDtypeStruct((B, HW, 128), jnp.float32),
        ),
        compiler_params=cparams,
    )(cols, w_flat, demod, noise_t, bias, s_rgb,
      w_rgb.astype(jnp.bfloat16), b_rgb)
    return out.reshape(B, H, W, Cout), rgb[:, :, :3].reshape(B, H, W, 3)


# ======================= plain-JAX glue =======================
def convert_to_coord_format(b, h, w):
    xs = jnp.linspace(-1.0, 1.0, w, dtype=jnp.float32)
    ys = jnp.linspace(-1.0, 1.0, h, dtype=jnp.float32)
    xg = jnp.tile(xs[None, :], (h, 1))
    yg = jnp.tile(ys[:, None], (1, w))
    coord = jnp.stack([xg, yg], axis=-1)                 # (h, w, 2)
    return jnp.tile(coord[None], (b, 1, 1, 1))


def unfold2x(x):
    # TODO(synk): Unfold() source unavailable; implemented as PixelShuffle (depth-to-space, r=2).
    B, H, W, C = x.shape
    r = 2
    c4 = C // (r * r)
    x = x.reshape(B, H, W, c4, r, r)
    x = x.transpose(0, 1, 4, 2, 5, 3)
    return x.reshape(B, H * r, W * r, c4)


def upsample_blur2(x):
    """StyleGAN2 Upsample(blur=[1,3,3,1], factor=2) applied to the 3-ch RGB skip (NHWC)."""
    factor = 2
    k1 = jnp.array([1.0, 3.0, 3.0, 1.0], jnp.float32)
    k = jnp.outer(k1, k1)
    k = k / jnp.sum(k) * (factor ** 2)
    p = 4 - factor
    pad_lo = (p + 1) // 2 + factor - 1
    pad_hi = p // 2 + factor - 1   # extra (factor-1) replaces trailing zero-insert of upfirdn2d
    B, H, W, C = x.shape
    kern = jnp.tile(k[None, None], (C, 1, 1, 1))        # (C, 1, 4, 4)
    return lax.conv_general_dilated(
        x, kern, window_strides=(1, 1),
        padding=((pad_lo, pad_hi), (pad_lo, pad_hi)),
        lhs_dilation=(factor, factor),
        dimension_numbers=("NHWC", "OIHW", "NHWC"),
        feature_group_count=C)


def pos_fold(params, temp):
    # TODO(synk): Con_PosFold6 source unavailable; approximated as space-to-depth(4)
    # followed by an equalized 1x1 projection (fused leaky-relu) to channels[4]=512.
    B, H, W, C = temp.shape
    r = 4
    x = temp.reshape(B, H // r, r, W // r, r, C).transpose(0, 1, 3, 2, 4, 5)
    x = x.reshape(B * (H // r) * (W // r), r * r * C)
    y = equal_linear(x, params["fold_w"], params["fold_b"], activation=True)   # K=16384, tk=4096
    return y.reshape(B, H // r, W // r, -1)


def transformer(params, frm, to):
    # TODO(synk): GANformer-style duplex attention (kmeans, gating, normalization) approximated
    # by plain cross-attention with multiplicative+additive ('both') integration.
    B, L, D = frm.shape
    S = to.shape[1]
    q = equal_linear(frm.reshape(B * L, D), params["attn_q_w"],
                     params["attn_q_b"]).reshape(B, L, D)
    kv = equal_linear(to.reshape(B * S, D), params["attn_kv_w"], params["attn_kv_b"])   # fused K|V
    k = kv[:, :D].reshape(B, S, D)
    v = kv[:, D:].reshape(B, S, D)
    ctx, att = cross_attention(q, k, v)
    gb = equal_linear(ctx.reshape(B * L, D), params["attn_gb_w"], params["attn_gb_b"])  # fused g|b
    gamma = gb[:, :D].reshape(B, L, D)
    beta = gb[:, D:].reshape(B, L, D)
    return frm * (1.0 + gamma) + beta, att


# ======================= forward =======================
def pixelface_forward(params, c_code_in, z, noise_key):
    """c_code_in: (B, text_dim, seq)   z: (B, style_dim)   -> image (B, 3, SIZE, SIZE) NCHW"""
    B = c_code_in.shape[0]

    # ---- text embedding path (self.linears): fused PixelNorm + 2 EqualLinear ----
    c = jnp.transpose(c_code_in, (0, 2, 1))                         # (B, S, text_dim)
    S = c.shape[1]
    cf = equal_mlp2(c.reshape(B * S, TEXT_DIM),
                    params["lin1_w"], params["lin1_b"],
                    params["lin2_w"], params["lin2_b"], prenorm=True)
    c_code = cf.reshape(B, S, STYLE_DIM)

    # ---- style mapping MLP (self.style): fused PixelNorm + N_MLP(=2) EqualLinear ----
    (w1, b1), (w2, b2) = params["style_mlp"]
    w_lat = equal_mlp2(z, w1, b1, w2, b2, prenorm=True)
    latent = jnp.tile(w_lat[:, None, :], (1, N_LATENT, 1))           # (B, n_latent, 512)

    # ---- constant input (resolution 4 * 2**num_fold = 16) ----
    out = jnp.tile(params["const"], (B, 1, 1, 1))                    # (B, 16, 16, 512)

    # ---- stage 0 ----
    H = W = SIZE
    coord = convert_to_coord_format(B, H, W)                         # (B, H, W, 2)
    emb = jnp.sin(jnp.einsum("bhwc,cd->bhwd", coord, params["lff_w"]) + params["lff_b"])

    temp = emb.reshape(B, H * W, STYLE_DIM)
    temp, att_map = transformer(params, temp, c_code)
    temp = temp.reshape(B, H, W, STYLE_DIM)
    # TODO(synk): factor-4 blur upsamples (temp_stage2/3) feed only stages >= 1; absent for size=16.

    temp_cat = jnp.concatenate([emb, temp + out], axis=-1)           # (B, 16, 16, 1024)
    out = pos_fold(params, temp_cat)                                 # (B, 4, 4, 512)

    skip = None
    for fold in range(NUM_FOLD):
        ci = fold * 2
        h = out.shape[1]
        n0 = jax.random.normal(jax.random.fold_in(noise_key, 2 * fold), (B, h, h, 1), jnp.float32)
        out = styled_conv3x3(out, latent[:, ci], params["convs"][ci], n0)
        out = unfold2x(out)
        h = out.shape[1]
        n1 = jax.random.normal(jax.random.fold_in(noise_key, 2 * fold + 1), (B, h, h, 1), jnp.float32)
        out, rgb = styled_conv3x3(out, latent[:, ci + 1], params["convs"][ci + 1], n1,
                                  rgb_params=params["to_rgbs"][fold],
                                  rgb_style=latent[:, ci + 2])
        skip = rgb if skip is None else rgb + upsample_blur2(skip)

    image = jnp.transpose(skip, (0, 3, 1, 2))                        # NCHW
    return image, att_map


# ======================= deterministic parameter init =======================
def init_params(key):
    keys = iter(jax.random.split(key, 64))

    def nxt():
        return next(keys)

    def eq_lin(in_dim, out_dim, bias_init=0.0):
        w = jax.random.normal(nxt(), (in_dim, out_dim), jnp.float32) / math.sqrt(in_dim)
        b = jnp.full((out_dim,), bias_init, jnp.float32)
        return w, b

    def mod_conv(cin, cout, k):
        w = jax.random.normal(nxt(), (k, k, cin, cout), jnp.float32) / math.sqrt(cin * k * k)
        mw, mb = eq_lin(STYLE_DIM, cin, bias_init=1.0)
        return dict(w=w, mod_w=mw, mod_b=mb, bias=jnp.zeros((cout,), jnp.float32),
                    strength=jnp.float32(0.0))     # NoiseInjection weight init = 0

    p = {}
    p["lin1_w"], p["lin1_b"] = eq_lin(TEXT_DIM, STYLE_DIM)
    p["lin2_w"], p["lin2_b"] = eq_lin(STYLE_DIM, STYLE_DIM)
    p["style_mlp"] = [eq_lin(STYLE_DIM, STYLE_DIM) for _ in range(N_MLP)]

    p["lff_w"] = jax.random.normal(nxt(), (2, STYLE_DIM), jnp.float32) * 8.0
    p["lff_b"] = jax.random.uniform(nxt(), (STYLE_DIM,), jnp.float32, -math.pi, math.pi)

    p["const"] = jax.random.normal(nxt(), (1, SIZE, SIZE, CHANNELS[SIZE]), jnp.float32)

    # attention projections: q separate; K|V and gamma|beta concatenated along N (call fusion)
    p["attn_q_w"], p["attn_q_b"] = eq_lin(STYLE_DIM, STYLE_DIM)
    kw, kb = eq_lin(STYLE_DIM, STYLE_DIM)
    vw, vb = eq_lin(STYLE_DIM, STYLE_DIM)
    p["attn_kv_w"] = jnp.concatenate([kw, vw], axis=1)
    p["attn_kv_b"] = jnp.concatenate([kb, vb], axis=0)
    gw, gb = eq_lin(STYLE_DIM, STYLE_DIM)
    bw, bb = eq_lin(STYLE_DIM, STYLE_DIM)
    p["attn_gb_w"] = jnp.concatenate([gw, bw], axis=1)
    p["attn_gb_b"] = jnp.concatenate([gb, bb], axis=0)

    p["fold_w"], p["fold_b"] = eq_lin(16 * (2 * CHANNELS[SIZE]), CHANNELS[4])

    # convs: (512->512 @4x4), (128->512 @8x8), (512->512 @8x8), (128->512 @16x16)
    p["convs"] = [
        mod_conv(CHANNELS[4], CHANNELS[8], 3),
        mod_conv(CHANNELS[8] // 4, CHANNELS[8], 3),
        mod_conv(CHANNELS[8], CHANNELS[16], 3),
        mod_conv(CHANNELS[16] // 4, CHANNELS[16], 3),
    ]

    def torgb(cin):
        w = jax.random.normal(nxt(), (cin, 3), jnp.float32) / math.sqrt(cin)
        mw, mb = eq_lin(STYLE_DIM, cin, bias_init=1.0)
        return dict(w=w, mod_w=mw, mod_b=mb, bias=jnp.zeros((3,), jnp.float32))

    p["to_rgbs"] = [torgb(CHANNELS[8]), torgb(CHANNELS[16])]
    return p


if __name__ == "__main__":
    key = jax.random.PRNGKey(0)
    kp, kc, kz, kn = jax.random.split(key, 4)

    params = init_params(kp)

    B, SEQ = 2, 8
    c_code = jax.random.normal(kc, (B, TEXT_DIM, SEQ), jnp.float32)   # (B, text_dim, seq)
    z = jax.random.normal(kz, (B, STYLE_DIM), jnp.float32)            # noise = [z]

    image, attn = pixelface_forward(params, c_code, z, kn)
    jax.block_until_ready(image)

    assert image.shape == (B, 3, SIZE, SIZE), image.shape
    assert attn.shape == (B, SIZE * SIZE, SEQ), attn.shape
    assert bool(jnp.all(jnp.isfinite(image)))
    print("KERNEL_OK")
</pallas_src>

<mosaic_0001>
module attributes {stable_mosaic.version = 11 : i64} {
  func.func @_mlp2_kernel(%arg0: i32, %arg1: memref<16x256xf32, #tpu.memory_space<vmem>>, %arg2: memref<256x512xbf16, #tpu.memory_space<vmem>>, %arg3: memref<1x512xf32, #tpu.memory_space<vmem>>, %arg4: memref<512x512xbf16, #tpu.memory_space<vmem>>, %arg5: memref<1x512xf32, #tpu.memory_space<vmem>>, %arg6: memref<16x512xf32, #tpu.memory_space<vmem>>) attributes {dimension_semantics = [#tpu.dimension_semantics<arbitrary>], iteration_bounds = array<i64: 1>, scalar_prefetch = 0 : i64, scratch_operands = 0 : i64, tpu.core_type = #tpu.core_type<tc>, window_params = [{pipeline_mode = #tpu.pipeline_mode<synchronous>, transform_indices = @transform_0, window_bounds = array<i64: 16, 256>}, {pipeline_mode = #tpu.pipeline_mode<synchronous>, transform_indices = @transform_1, window_bounds = array<i64: 256, 512>}, {pipeline_mode = #tpu.pipeline_mode<synchronous>, transform_indices = @transform_2, window_bounds = array<i64: 1, 512>}, {pipeline_mode = #tpu.pipeline_mode<synchronous>, transform_indices = @transform_3, window_bounds = array<i64: 512, 512>}, {pipeline_mode = #tpu.pipeline_mode<synchronous>, transform_indices = @transform_4, window_bounds = array<i64: 1, 512>}, {pipeline_mode = #tpu.pipeline_mode<synchronous>, transform_indices = @transform_5, window_bounds = array<i64: 16, 512>}]} {
    %c0 = arith.constant 0 : index
    %c0_0 = arith.constant 0 : index
    %0 = vector.load %arg1[%c0, %c0_0] : memref<16x256xf32, #tpu.memory_space<vmem>>, vector<16x256xf32>
    %1 = arith.mulf %0, %0 : vector<16x256xf32>
    %cst = arith.constant dense<0.000000e+00> : vector<16xf32>
    %2 = vector.multi_reduction <add>, %1, %cst [1] : vector<16x256xf32> to vector<16xf32>
    %3 = vector.shape_cast %2 : vector<16xf32> to vector<16x1xf32>
    %cst_1 = arith.constant 2.560000e+02 : f32
    %4 = vector.broadcast %cst_1 : f32 to vector<16x1xf32>
    %5 = arith.divf %3, %4 : vector<16x1xf32>
    %cst_2 = arith.constant 9.99999993E-9 : f32
    %6 = vector.broadcast %cst_2 : f32 to vector<16x1xf32>
    %7 = arith.addf %5, %6 : vector<16x1xf32>
    %8 = math.rsqrt %7 : vector<16x1xf32>
    %9 = vector.broadcast %8 : vector<16x1xf32> to vector<16x256xf32>
    %10 = arith.mulf %0, %9 : vector<16x256xf32>
    %11 = arith.truncf %10 : vector<16x256xf32> to vector<16x256xbf16>
    %c0_3 = arith.constant 0 : index
    %c0_4 = arith.constant 0 : index
    %12 = vector.load %arg2[%c0_3, %c0_4] : memref<256x512xbf16, #tpu.memory_space<vmem>>, vector<256x512xbf16>
    %cst_5 = arith.constant dense<0.000000e+00> : vector<16x512xf32>
    %13 = tpu.matmul %11, %12, %cst_5 {dimension_numbers = #tpu.dot_dimension_numbers<[1], [0], [0], [1], [0, 0, 1, 1], [], []>} : vector<16x256xbf16>, vector<256x512xbf16>, vector<16x512xf32> -> vector<16x512xf32>
    %c0_6 = arith.constant 0 : index
    %c0_7 = arith.constant 0 : index
    %14 = vector.load %arg3[%c0_6, %c0_7] : memref<1x512xf32, #tpu.memory_space<vmem>>, vector<1x512xf32>
    %15 = vector.broadcast %14 : vector<1x512xf32> to vector<16x512xf32>
    %16 = arith.addf %13, %15 : vector<16x512xf32>
    %cst_8 = arith.constant 0.000000e+00 : f32
    %17 = vector.broadcast %cst_8 : f32 to vector<16x512xf32>
    %18 = arith.cmpf oge, %16, %17 : vector<16x512xf32>
    %cst_9 = arith.constant 2.000000e-01 : f32
    %19 = vector.broadcast %cst_9 : f32 to vector<16x512xf32>
    %20 = arith.mulf %19, %16 : vector<16x512xf32>
    %21 = arith.select %18, %16, %20 : vector<16x512xi1>, vector<16x512xf32>
    %cst_10 = arith.constant 1.41421354 : f32
    %22 = vector.broadcast %cst_10 : f32 to vector<16x512xf32>
    %23 = arith.mulf %21, %22 : vector<16x512xf32>
    %24 = arith.truncf %23 : vector<16x512xf32> to vector<16x512xbf16>
    %c0_11 = arith.constant 0 : index
    %c0_12 = arith.constant 0 : index
    %25 = vector.load %arg4[%c0_11, %c0_12] : memref<512x512xbf16, #tpu.memory_space<vmem>>, vector<512x512xbf16>
    %cst_13 = arith.constant dense<0.000000e+00> : vector<16x512xf32>
    %26 = tpu.matmul %24, %25, %cst_13 {dimension_numbers = #tpu.dot_dimension_numbers<[1], [0], [0], [1], [0, 0, 1, 1], [], []>} : vector<16x512xbf16>, vector<512x512xbf16>, vector<16x512xf32> -> vector<16x512xf32>
    %c0_14 = arith.constant 0 : index
    %c0_15 = arith.constant 0 : index
    %27 = vector.load %arg5[%c0_14, %c0_15] : memref<1x512xf32, #tpu.memory_space<vmem>>, vector<1x512xf32>
    %28 = vector.broadcast %27 : vector<1x512xf32> to vector<16x512xf32>
    %29 = arith.addf %26, %28 : vector<16x512xf32>
    %cst_16 = arith.constant 0.000000e+00 : f32
    %30 = vector.broadcast %cst_16 : f32 to vector<16x512xf32>
    %31 = arith.cmpf oge, %29, %30 : vector<16x512xf32>
    %cst_17 = arith.constant 2.000000e-01 : f32
    %32 = vector.broadcast %cst_17 : f32 to vector<16x512xf32>
    %33 = arith.mulf %32, %29 : vector<16x512xf32>
    %34 = arith.select %31, %29, %33 : vector<16x512xi1>, vector<16x512xf32>
    %cst_18 = arith.constant 1.41421354 : f32
    %35 = vector.broadcast %cst_18 : f32 to vector<16x512xf32>
    %36 = arith.mulf %34, %35 : vector<16x512xf32>
    %c0_19 = arith.constant 0 : index
    %c0_20 = arith.constant 0 : index
    %37 = vector.load %arg6[%c0_19, %c0_20] : memref<16x512xf32, #tpu.memory_space<vmem>>, vector<16x512xf32>
    tpu.vector_store %arg6[%c0_19, %c0_20], %36 {strides = array<i32>} : memref<16x512xf32, #tpu.memory_space<vmem>>, vector<16x512xf32>,
    return
  }
  func.func @transform_0(%arg0: i32) -> (i32, i32) {
    %c0_i32 = arith.constant 0 : i32
    %c0_i32_0 = arith.constant 0 : i32
    %c0_i32_1 = arith.constant 0 : i32
    return %c0_i32, %c0_i32_0 : i32, i32
  }
  func.func @transform_1(%arg0: i32) -> (i32, i32) {
    %c0_i32 = arith.constant 0 : i32
    %c0_i32_0 = arith.constant 0 : i32
    %c0_i32_1 = arith.constant 0 : i32
    return %c0_i32, %c0_i32_0 : i32, i32
  }
  func.func @transform_2(%arg0: i32) -> (i32, i32) {
    %c0_i32 = arith.constant 0 : i32
    %c0_i32_0 = arith.constant 0 : i32
    %c0_i32_1 = arith.constant 0 : i32
    return %c0_i32, %c0_i32_0 : i32, i32
  }
  func.func @transform_3(%arg0: i32) -> (i32, i32) {
    %c0_i32 = arith.constant 0 : i32
    %c0_i32_0 = arith.constant 0 : i32
    %c0_i32_1 = arith.constant 0 : i32
    return %c0_i32, %c0_i32_0 : i32, i32
  }
  func.func @transform_4(%arg0: i32) -> (i32, i32) {
    %c0_i32 = arith.constant 0 : i32
    %c0_i32_0 = arith.constant 0 : i32
    %c0_i32_1 = arith.constant 0 : i32
    return %c0_i32, %c0_i32_0 : i32, i32
  }
  func.func @transform_5(%arg0: i32) -> (i32, i32) {
    %c0_i32 = arith.constant 0 : i32
    %c0_i32_0 = arith.constant 0 : i32
    %c0_i32_1 = arith.constant 0 : i32
    return %c0_i32, %c0_i32_0 : i32, i32
  }
}

</mosaic_0001>

<bundles_post_ra>
// kernel: tpu_custom_call.1
= control target key start
LH: loop header
LB: loop body
LE: loop exit
PB: predicated region body
PF: predicated region fallthrough
CT: control target
= control target key end

     0   :  { %10 = vsyncpa [#allocation3], 0  ;;  %s3019_s0 = inlined_call_operand.hbm [shape: f32[16,256], index: 0, kind: input, shape index: {}]   ;;  %s3020_s1 = inlined_call_operand.hbm [shape: bf16[256,512], index: 1, kind: input, shape index: {}]   ;;  %s3021_s2 = inlined_call_operand.hbm [shape: f32[1,512], index: 2, kind: input, shape index: {}]   ;;  %s3022_s3 = inlined_call_operand.hbm [shape: bf16[512,512], index: 3, kind: input, shape index: {}]   ;;  %s3023_s4 = inlined_call_operand.hbm [shape: f32[1,512], index: 4, kind: input, shape index: {}]   ;;  %s3024_s5 = inlined_call_operand.hbm [shape: f32[16,512], index: 5, kind: output, shape index: {}]  }
   0x1   :  { %11 = vsyncpa [#allocation6], 0 }
   0x2   :  { %12 = vsyncpa [#allocation9], 0 }
   0x3   :  { %13 = vsyncpa [#allocation4], 0  ;;  %s31_s20 = sshll.u32 %s3020_s1, 4  ;;  %s2880_s21 = smov [#allocation5]   ;;  %s32_s20 = int_to_ptr.hbm [resolvable:$true] %s31_s20 }
   0x4   :  { %s33_s22 = sshll.u32 %s2880_s21, 4  ;;  %s55_s25 = sshll.u32 %s3022_s3, 4  ;;  %s34_s22 = int_to_ptr.vmem [resolvable:$true] %s33_s22  ;;  %s56_s25 = int_to_ptr.hbm [resolvable:$true] %s55_s25 }
   0x5   :  { %s2881_s26 = smov 256   ;;  %s2882_s27 = smov 16  }
   0x6   :  { %39 = dma.hbm_to_vmem [thread:$0]  %s32_s20, 8192, %s34_s22, [#allocation6], %s2881_s26, %s2881_s26, %s2882_s27  }
   0x7   :  { %s2883_s28 = smov [#allocation8]   ;;  %s18_s7 = sshll.u32 %s3019_s0, 4  ;;  %s19_s7 = int_to_ptr.hbm [resolvable:$true] %s18_s7 }
   0x8   :  { %s57_s29 = sshll.u32 %s2883_s28, 4  ;;  %s45_s9 = sshll.u32 %s3021_s2, 4  ;;  %s58_s29 = int_to_ptr.vmem [resolvable:$true] %s57_s29  ;;  %s46_s9 = int_to_ptr.hbm [resolvable:$true] %s45_s9 }
   0x9   :  { %63 = dma.hbm_to_vmem [thread:$0]  %s56_s25, 16384, %s58_s29, [#allocation9], %s2881_s26, %s2881_s26, %s2882_s27  }
   0xa   :  { %s2884_s10 = smov [#allocation2]   ;;  %s2885_s3 = smov [#allocation7]  }
   0xb   :  { %s20_s11 = sshll.u32 %s2884_s10, 4  ;;  %s47_s12 = sshll.u32 %s2885_s3, 4  ;;  %s21_s11 = int_to_ptr.vmem [resolvable:$true] %s20_s11  ;;  %s48_s12 = int_to_ptr.vmem [resolvable:$true] %s47_s12 }
   0xc   :  { %26 = dma.hbm_to_vmem [thread:$0]  %s19_s7, 512, %s21_s11, [#allocation3], %s2881_s26, %s2881_s26, %s2882_s27  }
   0xd   :  { %s69_s15 = sshll.u32 %s3023_s4, 4  ;;  %s2886_s0 = smov [#allocation10]   ;;  %s70_s15 = int_to_ptr.hbm [resolvable:$true] %s69_s15 }
   0xe   :  { %50 = dma.hbm_to_vmem [thread:$0]  %s46_s9, 64, %s48_s12, [#allocation6]  }
   0xf   :  { %s71_s16 = sshll.u32 %s2886_s0, 4  ;;  %s72_s16 = int_to_ptr.vmem [resolvable:$true] %s71_s16 }
  0x10   :  { %74 = dma.hbm_to_vmem [thread:$0]  %s70_s15, 64, %s72_s16, [#allocation9]  }
  0x11   :  { %2872 = dma.done.wait [#allocation3], 512  }
  0x12   :  { %2873 = vsyncadd [#allocation3], 4294966784 }
  0x13   :  { %2874 = dma.done.wait [#allocation6], 8256  }
  0x14   :  { %2875 = vsyncadd [#allocation6], 4294959040 }
  0x15   :  { %2876 = dma.done.wait [#allocation9], 16448  }
  0x16   :  { %2877 = vsyncadd [#allocation9], 4294950848  ;;  %v2936_v0 = vld [vmem:[#allocation2] sm:$0xff]  ;;  %v2938_v1 = vld [vmem:[#allocation2 + $0x8] sm:$0xff]  ;;  %v2887_v53 = vmov 256.0   ;;  %s2888_s2 = smov [#allocation11]  }
  0x17   :  { %v2940_v2 = vld [vmem:[#allocation2 + $0x10] sm:$0xff]  ;;  %v99_v3 = vmul.f32 %v2936_v0, %v2936_v0  ;;  %v100_v4 = vmul.f32 %v2938_v1, %v2938_v1  ;;  %v2946_v5 = vld [vmem:[#allocation2 + $0x18] sm:$0xff]  ;;  %v1865_v6 = vld [vmem:[#allocation5 + $0xe0] sm:$0xf]  ;;  %2722 = vrcp.f32 %v2887_v53  ;;  %s1734_s4 = sshll.u32 %s2888_s2, 4  ;;  %s1736_s19 = sshll.u32 %s3024_s5, 4  ;;  %s1735_s4 = int_to_ptr.vmem [resolvable:$true] %s1734_s4  ;;  %s1737_s19 = int_to_ptr.hbm [resolvable:$true] %s1736_s19 }
  0x18   :  { %v2549_v7 = vld [vmem:[#allocation5 + $0xec] sm:$0xf0]  ;;  %v1993_v9 = vld [vmem:[#allocation5 + $0x1e0] sm:$0xf]  ;;  %v2547_v11 = vld [vmem:[#allocation5 + $0xe4] sm:$0xf]  ;;  %v101_v22 = vmul.f32 %v2940_v2, %v2940_v2  ;;  %v102_v23 = vmul.f32 %v2946_v5, %v2946_v5 }
  0x19   :  { %v1866_v8 = vor.u32 %v2549_v7, %v1865_v6  ;;  %v2581_v10 = vld [vmem:[#allocation5 + $0x1ec] sm:$0xf0]  ;;  %v103_v12 = vadd.f32 %v100_v4, %v99_v3  ;;  %v1867_v14 = vld [vmem:[#allocation5 + $0xf0] sm:$0xf0]  ;;  %v2579_v15 = vld [vmem:[#allocation5 + $0x1e4] sm:$0xf] }
  0x1a   :  { %v1994_v13 = vor.u32 %v2581_v10, %v1993_v9  ;;  %v1995_v16 = vld [vmem:[#allocation5 + $0x1f0] sm:$0xf0]  ;;  %v1870_v17 = vor.u32 %v2547_v11, %v1867_v14  ;;  %v1849_v19 = vld [vmem:[#allocation5 + $0xc0] sm:$0xf]  ;;  %v2545_v20 = vld [vmem:[#allocation5 + $0xcc] sm:$0xf0]  ;;  %v106_v41 = vadd.f32 %v102_v23, %v101_v22 }
  0x1b   :  { %540 = vmatpush.bf16.msra.mxu0 %v1866_v8  ;;  %v1998_v18 = vor.u32 %v2579_v15, %v1995_v16  ;;  %v1977_v21 = vld [vmem:[#allocation5 + $0x1c0] sm:$0xf]  ;;  %104 = vadd.xlane.f32.xlu0 %v103_v12  ;;  %v1850_v24 = vor.u32 %v2545_v20, %v1849_v19  ;;  %v2577_v25 = vld [vmem:[#allocation5 + $0x1cc] sm:$0xf0]  ;;  %v2543_v26 = vld [vmem:[#allocation5 + $0xc4] sm:$0xf] }
  0x1c   :  { %554 = vmatpush.bf16.msra.mxu1 %v1994_v13  ;;  %v1851_v27 = vld [vmem:[#allocation5 + $0xd0] sm:$0xf0]  ;;  %568 = vmatpush.bf16.msra.mxu2 %v1870_v17  ;;  %v1978_v28 = vor.u32 %v2577_v25, %v1977_v21  ;;  %v2575_v30 = vld [vmem:[#allocation5 + $0x1c4] sm:$0xf]  ;;  %v1833_v32 = vld [vmem:[#allocation5 + $0xa0] sm:$0xf] }
  0x1d   :  { %582 = vmatpush.bf16.msra.mxu3 %v1998_v18  ;;  %v1854_v29 = vor.u32 %v2543_v26, %v1851_v27  ;;  %v1979_v31 = vld [vmem:[#allocation5 + $0x1d0] sm:$0xf0]  ;;  %v2541_v34 = vld [vmem:[#allocation5 + $0xac] sm:$0xf0]  ;;  %v1961_v35 = vld [vmem:[#allocation5 + $0x1a0] sm:$0xf]  ;;  %v2952_v11 = vpop.eup %2722 }
  0x1e   :  { %v1982_v33 = vor.u32 %v2575_v30, %v1979_v31  ;;  %v2573_v36 = vld [vmem:[#allocation5 + $0x1ac] sm:$0xf0]  ;;  %v1834_v37 = vor.u32 %v2541_v34, %v1833_v32  ;;  %v2539_v38 = vld [vmem:[#allocation5 + $0xa4] sm:$0xf]  ;;  %v1835_v39 = vld [vmem:[#allocation5 + $0xb0] sm:$0xf0]  ;;  %vm114_vm0 = vweird.f32 %v2952_v11 }
  0x1f   :  { %541 = vmatpush.bf16.msra.mxu0 %v1850_v24  ;;  %v2571_v40 = vld [vmem:[#allocation5 + $0x1a4] sm:$0xf]  ;;  %v1962_v42 = vor.u32 %v2573_v36, %v1961_v35  ;;  %v1963_v43 = vld [vmem:[#allocation5 + $0x1b0] sm:$0xf0]  ;;  %v1838_v44 = vor.u32 %v2539_v38, %v1835_v39  ;;  %v1817_v46 = vld [vmem:[#allocation5 + $0x80] sm:$0xf] }
  0x20   :  { %555 = vmatpush.bf16.msra.mxu1 %v1978_v28  ;;  %569 = vmatpush.bf16.msra.mxu2 %v1854_v29  ;;  %v1966_v45 = vor.u32 %v2571_v40, %v1963_v43  ;;  %v2537_v47 = vld [vmem:[#allocation5 + $0x8c] sm:$0xf0]  ;;  %v1945_v48 = vld [vmem:[#allocation5 + $0x180] sm:$0xf]  ;;  %v2535_v51 = vld [vmem:[#allocation5 + $0x84] sm:$0xf] }
  0x21   :  { %583 = vmatpush.bf16.msra.mxu3 %v1982_v33  ;;  %v1818_v49 = vor.u32 %v2537_v47, %v1817_v46  ;;  %v2569_v50 = vld [vmem:[#allocation5 + $0x18c] sm:$0xf0]  ;;  %v1819_v52 = vld [vmem:[#allocation5 + $0x90] sm:$0xf0]  ;;  %v2567_v56 = vld [vmem:[#allocation5 + $0x184] sm:$0xf] }
  0x22   :  { %v1946_v54 = vor.u32 %v2569_v50, %v1945_v48  ;;  %v1822_v55 = vor.u32 %v2535_v51, %v1819_v52  ;;  %v1947_v57 = vld [vmem:[#allocation5 + $0x190] sm:$0xf0]  ;;  %v1801_v59 = vld [vmem:[#allocation5 + $0x60] sm:$0xf]  ;;  %v2533_v60 = vld [vmem:[#allocation5 + $0x6c] sm:$0xf0] }
  0x23   :  { %542 = vmatpush.bf16.msra.mxu0 %v1834_v37  ;;  %107 = vadd.xlane.f32.xlu0 %v106_v41  ;;  %v1950_v58 = vor.u32 %v2567_v56, %v1947_v57  ;;  %v1929_v61 = vld [vmem:[#allocation5 + $0x160] sm:$0xf]  ;;  %v1802_v62 = vor.u32 %v2533_v60, %v1801_v59  ;;  %v2565_v63 = vld [vmem:[#allocation5 + $0x16c] sm:$0xf0]  ;;  %v2531_v3 = vld [vmem:[#allocation5 + $0x64] sm:$0xf] }
  0x24   :  { %556 = vmatpush.bf16.msra.mxu1 %v1962_v42  ;;  %570 = vmatpush.bf16.msra.mxu2 %v1838_v44  ;;  %v1803_v4 = vld [vmem:[#allocation5 + $0x70] sm:$0xf0]  ;;  %v1930_v6 = vor.u32 %v2565_v63, %v1929_v61  ;;  %v2563_v8 = vld [vmem:[#allocation5 + $0x164] sm:$0xf]  ;;  %v1785_v12 = vld [vmem:[#allocation5 + $0x40] sm:$0xf] }
  0x25   :  { %584 = vmatpush.bf16.msra.mxu3 %v1966_v45  ;;  %v1806_v7 = vor.u32 %v2531_v3, %v1803_v4  ;;  %v1931_v9 = vld [vmem:[#allocation5 + $0x170] sm:$0xf0]  ;;  %v2529_v13 = vld [vmem:[#allocation5 + $0x4c] sm:$0xf0]  ;;  %v1913_v14 = vld [vmem:[#allocation5 + $0x140] sm:$0xf] }
  0x26   :  { %v1934_v10 = vor.u32 %v2563_v8, %v1931_v9  ;;  %v1786_v15 = vor.u32 %v2529_v13, %v1785_v12  ;;  %v2561_v16 = vld [vmem:[#allocation5 + $0x14c] sm:$0xf0]  ;;  %v2527_v17 = vld [vmem:[#allocation5 + $0x44] sm:$0xf]  ;;  %v1787_v18 = vld [vmem:[#allocation5 + $0x50] sm:$0xf0] }
  0x27   :  { %543 = vmatpush.bf16.msra.mxu0 %v1818_v49  ;;  %v1914_v19 = vor.u32 %v2561_v16, %v1913_v14  ;;  %v1790_v20 = vor.u32 %v2527_v17, %v1787_v18  ;;  %v2559_v21 = vld [vmem:[#allocation5 + $0x144] sm:$0xf]  ;;  %v1915_v22 = vld [vmem:[#allocation5 + $0x150] sm:$0xf0]  ;;  %v110_v23 = vmul.f32 256.0, %v2952_v11  ;;  %s2889_s20 = smov 512  }
  0x28   :  { %557 = vmatpush.bf16.msra.mxu1 %v1946_v54  ;;  %571 = vmatpush.bf16.msra.mxu2 %v1822_v55  ;;  %v1918_v24 = vor.u32 %v2559_v21, %v1915_v22  ;;  %v1769_v25 = vld [vmem:[#allocation5 + $0x20] sm:$0xf]  ;;  %v2525_v26 = vld [vmem:[#allocation5 + $0x2c] sm:$0xf0]  ;;  %v2523_v30 = vld [vmem:[#allocation5 + $0x24] sm:$0xf] }
  0x29   :  { %585 = vmatpush.bf16.msra.mxu3 %v1950_v58  ;;  %v1897_v27 = vld [vmem:[#allocation5 + $0x120] sm:$0xf]  ;;  %v1770_v28 = vor.u32 %v2525_v26, %v1769_v25  ;;  %v2557_v29 = vld [vmem:[#allocation5 + $0x12c] sm:$0xf0]  ;;  %v1771_v31 = vld [vmem:[#allocation5 + $0x30] sm:$0xf0] }
  0x2a   :  { %v1898_v32 = vor.u32 %v2557_v29, %v1897_v27  ;;  %v1774_v33 = vor.u32 %v2523_v30, %v1771_v31  ;;  %v2555_v34 = vld [vmem:[#allocation5 + $0x124] sm:$0xf]  ;;  %v1899_v35 = vld [vmem:[#allocation5 + $0x130] sm:$0xf0]  ;;  %v111_v36 = vsub.f32 1.0, %v110_v23  ;;  %s2890_s21 = smov 32  }
  0x2b   :  { %544 = vmatpush.bf16.msra.mxu0 %v1802_v62  ;;  %v1902_v37 = vor.u32 %v2555_v34, %v1899_v35  ;;  %v1753_v38 = vld [vmem:[#allocation5] sm:$0xf]  ;;  %v2521_v39 = vld [vmem:[#allocation5 + $0xc] sm:$0xf0]  ;;  %v2519_v43 = vld [vmem:[#allocation5 + $0x4] sm:$0xf] }
  0x2c   :  { %558 = vmatpush.bf16.msra.mxu1 %v1930_v6  ;;  %572 = vmatpush.bf16.msra.mxu2 %v1806_v7  ;;  %v1881_v40 = vld [vmem:[#allocation5 + $0x100] sm:$0xf]  ;;  %v1754_v41 = vor.u32 %v2521_v39, %v1753_v38  ;;  %v2553_v42 = vld [vmem:[#allocation5 + $0x10c] sm:$0xf0]  ;;  %v1755_v44 = vld [vmem:[#allocation5 + $0x10] sm:$0xf0]  ;;  %v112_v63 = vmul.f32 %v2952_v11, %v111_v36 }
  0x2d   :  { %586 = vmatpush.bf16.msra.mxu3 %v1934_v10  ;;  %v1882_v45 = vor.u32 %v2553_v42, %v1881_v40  ;;  %v1758_v46 = vor.u32 %v2519_v43, %v1755_v44  ;;  %v2551_v47 = vld [vmem:[#allocation5 + $0x104] sm:$0xf]  ;;  %v1883_v48 = vld [vmem:[#allocation5 + $0x110] sm:$0xf0]  ;;  %v1873_v49 = vld [vmem:[#allocation5 + $0xe8] sm:$0xf] }
  0x2e   :  { %v1886_v50 = vor.u32 %v2551_v47, %v1883_v48  ;;  %v2550_v51 = vld [vmem:[#allocation5 + $0xf4] sm:$0xf0]  ;;  %v2001_v52 = vld [vmem:[#allocation5 + $0x1e8] sm:$0xf]  ;;  %v2548_v56 = vld [vmem:[#allocation5 + $0xec] sm:$0xf] }
  0x2f   :  { %545 = vmatpush.bf16.msra.mxu0 %v1786_v15  ;;  %v2582_v53 = vld [vmem:[#allocation5 + $0x1f4] sm:$0xf0]  ;;  %v1874_v54 = vor.u32 %v2550_v51, %v1873_v49  ;;  %v1875_v57 = vld [vmem:[#allocation5 + $0xf8] sm:$0xf0]  ;;  %v2580_v58 = vld [vmem:[#allocation5 + $0x1ec] sm:$0xf] }
  0x30   :  { %559 = vmatpush.bf16.msra.mxu1 %v1914_v19  ;;  %573 = vmatpush.bf16.msra.mxu2 %v1790_v20  ;;  %v2002_v55 = vor.u32 %v2582_v53, %v2001_v52  ;;  %v1878_v59 = vor.u32 %v2548_v56, %v1875_v57  ;;  %v2003_v60 = vld [vmem:[#allocation5 + $0x1f8] sm:$0xf0]  ;;  %v1857_v61 = vld [vmem:[#allocation5 + $0xc8] sm:$0xf]  ;;  %v2546_v62 = vld [vmem:[#allocation5 + $0xd4] sm:$0xf0]  ;;  %v113_v19 = vadd.f32 %v2952_v11, %v112_v63 }
  0x31   :  { %587 = vmatpush.bf16.msra.mxu3 %v1918_v24  ;;  %v2006_v3 = vor.u32 %v2580_v58, %v2003_v60  ;;  %v1858_v4 = vor.u32 %v2546_v62, %v1857_v61  ;;  %v1985_v6 = vld [vmem:[#allocation5 + $0x1c8] sm:$0xf]  ;;  %v2578_v7 = vld [vmem:[#allocation5 + $0x1d4] sm:$0xf0]  ;;  %v2544_v8 = vld [vmem:[#allocation5 + $0xcc] sm:$0xf] }
  0x32   :  { %v1986_v9 = vor.u32 %v2578_v7, %v1985_v6  ;;  %v1859_v10 = vld [vmem:[#allocation5 + $0xd8] sm:$0xf0]  ;;  %v2576_v12 = vld [vmem:[#allocation5 + $0x1cc] sm:$0xf]  ;;  %v1841_v16 = vld [vmem:[#allocation5 + $0xa8] sm:$0xf] }
  0x33   :  { %546 = vmatpush.bf16.msra.mxu0 %v1770_v28  ;;  %v1987_v13 = vld [vmem:[#allocation5 + $0x1d8] sm:$0xf0]  ;;  %v1862_v14 = vor.u32 %v2544_v8, %v1859_v10  ;;  %v2542_v17 = vld [vmem:[#allocation5 + $0xb4] sm:$0xf0]  ;;  %v1969_v18 = vld [vmem:[#allocation5 + $0x1a8] sm:$0xf] }
  0x34   :  { %560 = vmatpush.bf16.msra.mxu1 %v1898_v32  ;;  %574 = vmatpush.bf16.msra.mxu2 %v1774_v33  ;;  %v1990_v15 = vor.u32 %v2576_v12, %v1987_v13  ;;  %v1842_v20 = vor.u32 %v2542_v17, %v1841_v16  ;;  %v2574_v21 = vld [vmem:[#allocation5 + $0x1b4] sm:$0xf0]  ;;  %v2540_v22 = vld [vmem:[#allocation5 + $0xac] sm:$0xf]  ;;  %v1843_v23 = vld [vmem:[#allocation5 + $0xb8] sm:$0xf0]  ;;  %v115_v32 = vsel %vm114_vm0, %v2952_v11, %v113_v19 }
  0x35   :  { %588 = vmatpush.bf16.msra.mxu3 %v1902_v37  ;;  %v1970_v24 = vor.u32 %v2574_v21, %v1969_v18  ;;  %v1846_v25 = vor.u32 %v2540_v22, %v1843_v23  ;;  %v2572_v26 = vld [vmem:[#allocation5 + $0x1ac] sm:$0xf]  ;;  %v1971_v27 = vld [vmem:[#allocation5 + $0x1b8] sm:$0xf0]  ;;  %v1825_v29 = vld [vmem:[#allocation5 + $0x88] sm:$0xf] }
  0x36   :  { %v1974_v28 = vor.u32 %v2572_v26, %v1971_v27  ;;  %v2538_v30 = vld [vmem:[#allocation5 + $0x94] sm:$0xf0]  ;;  %v1953_v31 = vld [vmem:[#allocation5 + $0x188] sm:$0xf]  ;;  %v2536_v35 = vld [vmem:[#allocation5 + $0x8c] sm:$0xf] }
  0x37   :  { %547 = vmatpush.bf16.msra.mxu0 %v1754_v41  ;;  %v1826_v33 = vor.u32 %v2538_v30, %v1825_v29  ;;  %v2570_v34 = vld [vmem:[#allocation5 + $0x194] sm:$0xf0]  ;;  %v1827_v36 = vld [vmem:[#allocation5 + $0x98] sm:$0xf0]  ;;  %v2568_v39 = vld [vmem:[#allocation5 + $0x18c] sm:$0xf] }
  0x38   :  { %561 = vmatpush.bf16.msra.mxu1 %v1882_v45  ;;  %575 = vmatpush.bf16.msra.mxu2 %v1758_v46  ;;  %v1954_v37 = vor.u32 %v2570_v34, %v1953_v31  ;;  %v1830_v38 = vor.u32 %v2536_v35, %v1827_v36  ;;  %v1955_v40 = vld [vmem:[#allocation5 + $0x198] sm:$0xf0]  ;;  %v1809_v44 = vld [vmem:[#allocation5 + $0x68] sm:$0xf]  ;;  %v2534_v45 = vld [vmem:[#allocation5 + $0x74] sm:$0xf0] }
  0x39   :  { %589 = vmatpush.bf16.msra.mxu3 %v1886_v50  ;;  %v1958_v42 = vor.u32 %v2568_v39, %v1955_v40  ;;  %v1937_v11 = vld [vmem:[#allocation5 + $0x168] sm:$0xf]  ;;  %v1810_v47 = vor.u32 %v2534_v45, %v1809_v44  ;;  %v2566_v48 = vld [vmem:[#allocation5 + $0x174] sm:$0xf0]  ;;  %v2532_v49 = vld [vmem:[#allocation5 + $0x6c] sm:$0xf] }
  0x3a   :  { %v1938_v50 = vor.u32 %v2566_v48, %v1937_v11  ;;  %v1811_v51 = vld [vmem:[#allocation5 + $0x78] sm:$0xf0]  ;;  %v2564_v52 = vld [vmem:[#allocation5 + $0x16c] sm:$0xf]  ;;  %v1793_v56 = vld [vmem:[#allocation5 + $0x48] sm:$0xf] }
  0x3b   :  { %596 = vmatpush.bf16.msrb.mxu0 %v1874_v54  ;;  %v1939_v53 = vld [vmem:[#allocation5 + $0x178] sm:$0xf0]  ;;  %v1814_v54 = vor.u32 %v2532_v49, %v1811_v51  ;;  %v2530_v57 = vld [vmem:[#allocation5 + $0x54] sm:$0xf0]  ;;  %v1921_v58 = vld [vmem:[#allocation5 + $0x148] sm:$0xf] }
  0x3c   :  { %610 = vmatpush.bf16.msrb.mxu1 %v2002_v55  ;;  %624 = vmatpush.bf16.msrb.mxu2 %v1878_v59  ;;  %v1942_v55 = vor.u32 %v2564_v52, %v1939_v53  ;;  %v1794_v59 = vor.u32 %v2530_v57, %v1793_v56  ;;  %v2562_v60 = vld [vmem:[#allocation5 + $0x154] sm:$0xf0]  ;;  %v2528_v61 = vld [vmem:[#allocation5 + $0x4c] sm:$0xf]  ;;  %v1795_v62 = vld [vmem:[#allocation5 + $0x58] sm:$0xf0] }
  0x3d   :  { %638 = vmatpush.bf16.msrb.mxu3 %v2006_v3  ;;  %v1922_v63 = vor.u32 %v2562_v60, %v1921_v58  ;;  %v1798_v3 = vor.u32 %v2528_v61, %v1795_v62  ;;  %v1923_v6 = vld [vmem:[#allocation5 + $0x158] sm:$0xf0]  ;;  %v1777_v7 = vld [vmem:[#allocation5 + $0x28] sm:$0xf]  ;;  %v2526_v10 = vld [vmem:[#allocation5 + $0x34] sm:$0xf0] }
  0x3e   :  { %v1905_v12 = vld [vmem:[#allocation5 + $0x128] sm:$0xf]  ;;  %v2558_v13 = vld [vmem:[#allocation5 + $0x134] sm:$0xf0]  ;;  %v1779_v16 = vld [vmem:[#allocation5 + $0x38] sm:$0xf0]  ;;  %v1778_v18 = vor.u32 %v2526_v10, %v1777_v7 }
  0x3f   :  { %597 = vmatpush.bf16.msrb.mxu0 %v1858_v4  ;;  %v2560_v4 = vld [vmem:[#allocation5 + $0x14c] sm:$0xf]  ;;  %v1906_v19 = vor.u32 %v2558_v13, %v1905_v12  ;;  %v1761_v21 = vld [vmem:[#allocation5 + $0x8] sm:$0xf]  ;;  %v2522_v22 = vld [vmem:[#allocation5 + $0x14] sm:$0xf0] }
  0x40   :  { %611 = vmatpush.bf16.msrb.mxu1 %v1986_v9  ;;  %625 = vmatpush.bf16.msrb.mxu2 %v1862_v14  ;;  %v1926_v9 = vor.u32 %v2560_v4, %v1923_v6  ;;  %v2556_v17 = vld [vmem:[#allocation5 + $0x12c] sm:$0xf]  ;;  %v1889_v26 = vld [vmem:[#allocation5 + $0x108] sm:$0xf]  ;;  %v2554_v27 = vld [vmem:[#allocation5 + $0x114] sm:$0xf0]  ;;  %v1762_v35 = vor.u32 %v2522_v22, %v1761_v21 }
  0x41   :  { %639 = vmatpush.bf16.msrb.mxu3 %v1990_v15  ;;  %v2524_v15 = vld [vmem:[#allocation5 + $0x2c] sm:$0xf]  ;;  %v1763_v31 = vld [vmem:[#allocation5 + $0x18] sm:$0xf0]  ;;  %v1890_v36 = vor.u32 %v2554_v27, %v1889_v26  ;;  %v2121_v49 = vld [vmem:[#allocation8 + $0xe0] sm:$0xf] }
  0x42   :  { %v2520_v30 = vld [vmem:[#allocation5 + $0xc] sm:$0xf]  ;;  %v2249_v52 = vld [vmem:[#allocation8 + $0x1e0] sm:$0xf]  ;;  %v2645_v53 = vld [vmem:[#allocation8 + $0x1ec] sm:$0xf0] }
  0x43   :  { %598 = vmatpush.bf16.msrb.mxu0 %v1842_v20  ;;  %v1907_v20 = vld [vmem:[#allocation5 + $0x138] sm:$0xf0]  ;;  %v2677_v58 = vld [vmem:[#allocation8 + $0x2ec] sm:$0xf0]  ;;  %v2250_v6 = vor.u32 %v2645_v53, %v2249_v52  ;;  %v2233_v7 = vld [vmem:[#allocation8 + $0x1c0] sm:$0xf] }
  0x44   :  { %612 = vmatpush.bf16.msrb.mxu1 %v1970_v24  ;;  %626 = vmatpush.bf16.msrb.mxu2 %v1846_v25  ;;  %v1782_v25 = vor.u32 %v2524_v15, %v1779_v16  ;;  %v1910_v29 = vor.u32 %v2556_v17, %v1907_v20  ;;  %v2709_v60 = vld [vmem:[#allocation8 + $0x3ec] sm:$0xf0]  ;;  %v2089_v13 = vld [vmem:[#allocation8 + $0xa0] sm:$0xf] }
  0x45   :  { %640 = vmatpush.bf16.msrb.mxu3 %v1974_v28  ;;  %v2609_v4 = vld [vmem:[#allocation8 + $0xcc] sm:$0xf0]  ;;  %v2217_v16 = vld [vmem:[#allocation8 + $0x1a0] sm:$0xf] }
  0x46   :  { %v2705_v10 = vld [vmem:[#allocation8 + $0x3cc] sm:$0xf0]  ;;  %v2473_v22 = vld [vmem:[#allocation8 + $0x3a0] sm:$0xf] }
  0x47   :  { %599 = vmatpush.bf16.msrb.mxu0 %v1826_v33  ;;  %v1891_v33 = vld [vmem:[#allocation5 + $0x118] sm:$0xf0]  ;;  %v2637_v17 = vld [vmem:[#allocation8 + $0x1ac] sm:$0xf0]  ;;  %v2297_v53 = vld [vmem:[#allocation8 + $0x240] sm:$0xf] }
  0x48   :  { %613 = vmatpush.bf16.msrb.mxu1 %v1954_v37  ;;  %627 = vmatpush.bf16.msrb.mxu2 %v1830_v38  ;;  %v1766_v37 = vor.u32 %v2520_v30, %v1763_v31  ;;  %v2669_v21 = vld [vmem:[#allocation8 + $0x2ac] sm:$0xf0]  ;;  %v2218_v27 = vor.u32 %v2637_v17, %v2217_v16  ;;  %v2329_v31 = vld [vmem:[#allocation8 + $0x280] sm:$0xf]  ;;  %v2091_v16 = vld [vmem:[#allocation8 + $0xb0] sm:$0xf0] }
  0x49   :  { %641 = vmatpush.bf16.msrb.mxu3 %v1958_v42  ;;  %v2601_v26 = vld [vmem:[#allocation8 + $0x8c] sm:$0xf0] }
  0x4b   :  { %600 = vmatpush.bf16.msrb.mxu0 %v1810_v47 }
  0x4c   :  { %614 = vmatpush.bf16.msrb.mxu1 %v1938_v50  ;;  %628 = vmatpush.bf16.msrb.mxu2 %v1814_v54  ;;  %v2613_v50 = vld [vmem:[#allocation8 + $0xec] sm:$0xf0]  ;;  %v2377_v54 = vld [vmem:[#allocation8 + $0x2e0] sm:$0xf] }
  0x4d   :  { %642 = vmatpush.bf16.msrb.mxu3 %v1942_v55 }
  0x4f   :  { %601 = vmatpush.bf16.msrb.mxu0 %v1794_v59  ;;  %v2505_v59 = vld [vmem:[#allocation8 + $0x3e0] sm:$0xf] }
  0x50   :  { %615 = vmatpush.bf16.msrb.mxu1 %v1922_v63  ;;  %629 = vmatpush.bf16.msrb.mxu2 %v1798_v3  ;;  %v2122_v63 = vor.u32 %v2613_v50, %v2121_v49  ;;  %v2105_v3 = vld [vmem:[#allocation8 + $0xc0] sm:$0xf]  ;;  %v2593_v49 = vld [vmem:[#allocation8 + $0x4c] sm:$0xf0] }
  0x51   :  { %643 = vmatpush.bf16.msrb.mxu3 %v1926_v9  ;;  %v2361_v9 = vld [vmem:[#allocation8 + $0x2c0] sm:$0xf]  ;;  %v2106_v12 = vor.u32 %v2609_v4, %v2105_v3  ;;  %v2585_v4 = vld [vmem:[#allocation8 + $0xc] sm:$0xf0] }
  0x52   :  { %v2169_v50 = vld [vmem:[#allocation8 + $0x140] sm:$0xf] }
  0x53   :  { %602 = vmatpush.bf16.msrb.mxu0 %v1778_v18  ;;  %v2009_v3 = vld [vmem:[#allocation8] sm:$0xf] }
  0x54   :  { %616 = vmatpush.bf16.msrb.mxu1 %v1906_v19  ;;  %630 = vmatpush.bf16.msrb.mxu2 %v1782_v25  ;;  %v2345_v19 = vld [vmem:[#allocation8 + $0x2a0] sm:$0xf] }
  0x55   :  { %644 = vmatpush.bf16.msrb.mxu3 %v1910_v29  ;;  %v2073_v25 = vld [vmem:[#allocation8 + $0x80] sm:$0xf]  ;;  %v2633_v29 = vld [vmem:[#allocation8 + $0x18c] sm:$0xf0]  ;;  %v2346_v30 = vor.u32 %v2669_v21, %v2345_v19  ;;  %v2639_v21 = vld [vmem:[#allocation8 + $0x1c4] sm:$0xf] }
  0x56   :  { %v2693_v19 = vld [vmem:[#allocation8 + $0x36c] sm:$0xf0] }
  0x57   :  { %603 = vmatpush.bf16.msrb.mxu0 %v1762_v35  ;;  %v2697_v35 = vld [vmem:[#allocation8 + $0x38c] sm:$0xf0] }
  0x58   :  { %617 = vmatpush.bf16.msrb.mxu1 %v1890_v36  ;;  %631 = vmatpush.bf16.msrb.mxu2 %v1766_v37  ;;  %v2074_v36 = vor.u32 %v2601_v26, %v2073_v25  ;;  %v2057_v37 = vld [vmem:[#allocation8 + $0x60] sm:$0xf]  ;;  %v2653_v25 = vld [vmem:[#allocation8 + $0x22c] sm:$0xf0] }
  0x8e   :  { %v105_v41 = vpop.xlane.xlu0 %104 }
  0x8f   :  { %v116_v43 = vmul.f32 %v115_v32, %v105_v41 }
  0x91   :  { %v2959_v46 = vadd.f32 1e-08, %v116_v43 }
  0x93   :  { %2724 = vrsqrt.f32 %v2959_v46  ;;  %vm126_vm2 = vweird.f32 %v2959_v46 }
  0x96   :  { %v108_v8 = vpop.xlane.xlu0 %107 }
  0x97   :  { %v117_v14 = vmul.f32 %v115_v32, %v108_v8  ;;  %v2552_v32 = vld [vmem:[#allocation5 + $0x10c] sm:$0xf]  ;;  %v2641_v8 = vld [vmem:[#allocation8 + $0x1cc] sm:$0xf0] }
  0x98   :  { %v1894_v39 = vor.u32 %v2552_v32, %v1891_v33  ;;  %v2234_v15 = vor.u32 %v2641_v8, %v2233_v7  ;;  %v2665_v33 = vld [vmem:[#allocation8 + $0x28c] sm:$0xf0]  ;;  %v2611_v7 = vld [vmem:[#allocation8 + $0xe4] sm:$0xf] }
  0x99   :  { %v2725_v23 = vpop.eup %2724  ;;  %v119_v24 = vadd.f32 1e-08, %v117_v14  ;;  %v2605_v14 = vld [vmem:[#allocation8 + $0xac] sm:$0xf0] }
  0x9a   :  { %v121_v28 = vmul.f32 %v2725_v23, %v2959_v46  ;;  %645 = vmatpush.bf16.msrb.mxu3 %v1894_v39  ;;  %vm127_vm1 = vweird.f32 %v2725_v23  ;;  %v2597_v39 = vld [vmem:[#allocation8 + $0x6c] sm:$0xf0] }
  0x9b   :  { %2726 = vrsqrt.f32 %v119_v24  ;;  %vm128_vm4 = vmor %vm126_vm2, %vm127_vm1  ;;  %vm136_vm5 = vweird.f32 %v119_v24  ;;  %v2617_v8 = vld [vmem:[#allocation8 + $0x10c] sm:$0xf0] }
  0x9c   :  { %v122_v34 = vmul.f32 %v2725_v23, %v121_v28  ;;  %v2201_v28 = vld [vmem:[#allocation8 + $0x180] sm:$0xf] }
  0x9e   :  { %v123_v38 = vmul.f32 0.5, %v122_v34  ;;  %v2457_v34 = vld [vmem:[#allocation8 + $0x380] sm:$0xf] }
  0xa0   :  { %v124_v41 = vsub.f32 1.5, %v123_v38  ;;  %v2202_v38 = vor.u32 %v2633_v29, %v2201_v28  ;;  %v2075_v28 = vld [vmem:[#allocation8 + $0x90] sm:$0xf0] }
  0xa1   :  { %v2727_v40 = vpop.eup %2726 }
  0xa2   :  { %v131_v42 = vmul.f32 %v2727_v40, %v119_v24  ;;  %v125_v44 = vmul.f32 %v2725_v23, %v124_v41  ;;  %vm137_vm3 = vweird.f32 %v2727_v40  ;;  %v2090_v24 = vor.u32 %v2605_v14, %v2089_v13  ;;  %v2629_v41 = vld [vmem:[#allocation8 + $0x16c] sm:$0xf0]  ;;  %v2107_v13 = vld [vmem:[#allocation8 + $0xd0] sm:$0xf0] }
  0xa3   :  { %vm138_vm6 = vmor %vm136_vm5, %vm137_vm3 }
  0xa4   :  { %v132_v43 = vmul.f32 %v2727_v40, %v131_v42  ;;  %v129_v47 = vsel %vm128_vm4, %v2725_v23, %v125_v44  ;;  %v2701_v23 = vld [vmem:[#allocation8 + $0x3ac] sm:$0xf0]  ;;  %v2330_v42 = vor.u32 %v2665_v33, %v2329_v31  ;;  %v2313_v44 = vld [vmem:[#allocation8 + $0x260] sm:$0xf]  ;;  %v2635_v33 = vld [vmem:[#allocation8 + $0x1a4] sm:$0xf] }
  0xa5   :  { %v140_v55 = vmul.f32 %v129_v47, %v2936_v0  ;;  %v141_v57 = vmul.f32 %v129_v47, %v2938_v1  ;;  %v2378_v0 = vor.u32 %v2677_v58, %v2377_v54  ;;  %v2673_v1 = vld [vmem:[#allocation8 + $0x2cc] sm:$0xf0]  ;;  %v2474_v32 = vor.u32 %v2701_v23, %v2473_v22  ;;  %v2041_v47 = vld [vmem:[#allocation8 + $0x40] sm:$0xf]  ;;  %v2235_v22 = vld [vmem:[#allocation8 + $0x1d0] sm:$0xf0] }
  0xa6   :  { %v133_v45 = vmul.f32 0.5, %v132_v43  ;;  %v2362_v18 = vor.u32 %v2673_v1, %v2361_v9  ;;  %v2458_v43 = vor.u32 %v2697_v35, %v2457_v34  ;;  %v2657_v54 = vld [vmem:[#allocation8 + $0x24c] sm:$0xf0]  ;;  %v2153_v58 = vld [vmem:[#allocation8 + $0x120] sm:$0xf]  ;;  %v2238_v23 = vor.u32 %v2639_v21, %v2235_v22 }
  0xa7   :  { %v2251_v9 = vld [vmem:[#allocation8 + $0x1f0] sm:$0xf0]  ;;  %v2689_v31 = vld [vmem:[#allocation8 + $0x34c] sm:$0xf0]  ;;  %v2699_v22 = vld [vmem:[#allocation8 + $0x3a4] sm:$0xf] }
  0xa8   :  { %v134_v11 = vsub.f32 1.5, %v133_v45  ;;  %v2661_v45 = vld [vmem:[#allocation8 + $0x26c] sm:$0xf0]  ;;  %v2219_v34 = vld [vmem:[#allocation8 + $0x1b0] sm:$0xf0] }
  0xa9   :  { %v2314_v52 = vor.u32 %v2661_v45, %v2313_v44  ;;  %v2222_v35 = vor.u32 %v2635_v33, %v2219_v34  ;;  %v2409_v44 = vld [vmem:[#allocation8 + $0x320] sm:$0xf]  ;;  %v2155_v21 = vld [vmem:[#allocation8 + $0x130] sm:$0xf0] }
  0xaa   :  { %v135_v48 = vmul.f32 %v2727_v40, %v134_v11  ;;  %v2058_v11 = vor.u32 %v2597_v39, %v2057_v37  ;;  %v2649_v37 = vld [vmem:[#allocation8 + $0x20c] sm:$0xf0]  ;;  %v2595_v39 = vld [vmem:[#allocation8 + $0x64] sm:$0xf]  ;;  %v2459_v33 = vld [vmem:[#allocation8 + $0x390] sm:$0xf0] }
  0xac   :  { %v139_v51 = vsel %vm138_vm6, %v2727_v40, %v135_v48  ;;  %v2185_v40 = vld [vmem:[#allocation8 + $0x160] sm:$0xf] }
  0xad   :  { %v142_v56 = vmul.f32 %v139_v51, %v2940_v2  ;;  %v143_v46 = vmul.f32 %v139_v51, %v2946_v5  ;;  %v2506_v2 = vor.u32 %v2709_v60, %v2505_v59  ;;  %v2489_v5 = vld [vmem:[#allocation8 + $0x3c0] sm:$0xf]  ;;  %v2186_v48 = vor.u32 %v2629_v41, %v2185_v40  ;;  %v2625_v51 = vld [vmem:[#allocation8 + $0x14c] sm:$0xf0]  ;;  %v2059_v40 = vld [vmem:[#allocation8 + $0x70] sm:$0xf0] }
  0xae   :  { %v2490_v20 = vor.u32 %v2705_v10, %v2489_v5  ;;  %v2621_v59 = vld [vmem:[#allocation8 + $0x12c] sm:$0xf0]  ;;  %v2298_v60 = vor.u32 %v2657_v54, %v2297_v53  ;;  %v2675_v41 = vld [vmem:[#allocation8 + $0x2e4] sm:$0xf] }
  0xaf   :  { %v2968_v61 = vpack.c.bf16 %v142_v56, %v140_v55  ;;  %v2970_v62 = vpack.c.bf16 %v143_v46, %v141_v57  ;;  %v2042_v55 = vor.u32 %v2593_v49, %v2041_v47  ;;  %v2025_v56 = vld [vmem:[#allocation8 + $0x20] sm:$0xf]  ;;  %v2170_v57 = vor.u32 %v2625_v51, %v2169_v50  ;;  %v2589_v46 = vld [vmem:[#allocation8 + $0x2c] sm:$0xf0]  ;;  %v2631_v47 = vld [vmem:[#allocation8 + $0x184] sm:$0xf] }
  0xb0   :  { %v2591_v51 = vld [vmem:[#allocation8 + $0x44] sm:$0xf] }
  0xb1   :  { %548 = vmatmul.bf16.vlgmr.msra.gmra.mxu0 %v2968_v61  ;;  %562 = vmatmul.bf16.vlgmr.msra.gmra.mxu1 %v2970_v62  ;;  %v2671_v53 = vld [vmem:[#allocation8 + $0x2c4] sm:$0xf] }
  0xb2   :  { %576 = vmatmul.bf16.vlgmr.msra.gmra.mxu2 %v2968_v61  ;;  %590 = vmatmul.bf16.vlgmr.msra.gmra.mxu3 %v2970_v62 }
  0xb3   :  { %1466 = vmatpush.bf16.msra.mxu0 %v2122_v63  ;;  %1480 = vmatpush.bf16.msra.mxu1 %v2250_v6  ;;  %v2026_v63 = vor.u32 %v2589_v46, %v2025_v56  ;;  %v2154_v6 = vor.u32 %v2621_v59, %v2153_v58  ;;  %v2393_v56 = vld [vmem:[#allocation8 + $0x300] sm:$0xf]  ;;  %v2627_v59 = vld [vmem:[#allocation8 + $0x164] sm:$0xf] }
  0xb4   :  { %1494 = vmatpush.bf16.msra.mxu2 %v2378_v0  ;;  %1508 = vmatpush.bf16.msra.mxu3 %v2506_v2  ;;  %v2643_v0 = vld [vmem:[#allocation8 + $0x1e4] sm:$0xf]  ;;  %v2010_v2 = vor.u32 %v2585_v4, %v2009_v3  ;;  %v2507_v4 = vld [vmem:[#allocation8 + $0x3f0] sm:$0xf0] }
  0xb5   :  { %v2254_v10 = vor.u32 %v2643_v0, %v2251_v9  ;;  %v2347_v0 = vld [vmem:[#allocation8 + $0x2b0] sm:$0xf0] }
  0xb7   :  { %1467 = vmatpush.bf16.msra.mxu0 %v2106_v12  ;;  %1481 = vmatpush.bf16.msra.mxu1 %v2234_v15  ;;  %v2607_v12 = vld [vmem:[#allocation8 + $0xc4] sm:$0xf] }
  0xb8   :  { %1495 = vmatpush.bf16.msra.mxu2 %v2362_v18  ;;  %1509 = vmatpush.bf16.msra.mxu3 %v2490_v20  ;;  %v2110_v14 = vor.u32 %v2607_v12, %v2107_v13  ;;  %v2603_v15 = vld [vmem:[#allocation8 + $0xa4] sm:$0xf]  ;;  %v2441_v18 = vld [vmem:[#allocation8 + $0x360] sm:$0xf]  ;;  %v2491_v12 = vld [vmem:[#allocation8 + $0x3d0] sm:$0xf0] }
  0xb9   :  { %v2094_v17 = vor.u32 %v2603_v15, %v2091_v16  ;;  %v2442_v20 = vor.u32 %v2693_v19, %v2441_v18  ;;  %v2011_v15 = vld [vmem:[#allocation8 + $0x10] sm:$0xf0]  ;;  %v2663_v16 = vld [vmem:[#allocation8 + $0x284] sm:$0xf] }
  0xba   :  { %v2331_v18 = vld [vmem:[#allocation8 + $0x290] sm:$0xf0] }
  0xbb   :  { %1468 = vmatpush.bf16.msra.mxu0 %v2090_v24  ;;  %1482 = vmatpush.bf16.msra.mxu1 %v2218_v27  ;;  %v2281_v24 = vld [vmem:[#allocation8 + $0x220] sm:$0xf]  ;;  %v2599_v27 = vld [vmem:[#allocation8 + $0x84] sm:$0xf]  ;;  %v2334_v19 = vor.u32 %v2663_v16, %v2331_v18 }
  0xbc   :  { %1496 = vmatpush.bf16.msra.mxu2 %v2346_v30  ;;  %1510 = vmatpush.bf16.msra.mxu3 %v2474_v32  ;;  %v2282_v26 = vor.u32 %v2653_v25, %v2281_v24  ;;  %v2078_v29 = vor.u32 %v2599_v27, %v2075_v28  ;;  %v2425_v30 = vld [vmem:[#allocation8 + $0x340] sm:$0xf]  ;;  %v2475_v24 = vld [vmem:[#allocation8 + $0x3b0] sm:$0xf0] }
  0xbd   :  { %v2426_v32 = vor.u32 %v2689_v31, %v2425_v30  ;;  %v2478_v25 = vor.u32 %v2699_v22, %v2475_v24  ;;  %v2315_v27 = vld [vmem:[#allocation8 + $0x270] sm:$0xf0]  ;;  %v2695_v31 = vld [vmem:[#allocation8 + $0x384] sm:$0xf] }
  0xbe   :  { %v2139_v30 = vld [vmem:[#allocation8 + $0x110] sm:$0xf0]  ;;  %v2462_v34 = vor.u32 %v2695_v31, %v2459_v33  ;;  %v2257_v33 = vld [vmem:[#allocation8 + $0x1e8] sm:$0xf] }
  0xbf   :  { %1469 = vmatpush.bf16.msra.mxu0 %v2074_v36  ;;  %1483 = vmatpush.bf16.msra.mxu1 %v2202_v38  ;;  %v2265_v36 = vld [vmem:[#allocation8 + $0x200] sm:$0xf] }
  0xc0   :  { %1497 = vmatpush.bf16.msra.mxu2 %v2330_v42  ;;  %1511 = vmatpush.bf16.msra.mxu3 %v2458_v43  ;;  %v2266_v38 = vor.u32 %v2649_v37, %v2265_v36  ;;  %v2062_v42 = vor.u32 %v2595_v39, %v2059_v40  ;;  %v2379_v43 = vld [vmem:[#allocation8 + $0x2f0] sm:$0xf0]  ;;  %v2655_v36 = vld [vmem:[#allocation8 + $0x244] sm:$0xf] }
  0xc1   :  { %604 = vmatmul.bf16.vlgmr.msrb.gmra.mxu0 %v2968_v61  ;;  %618 = vmatmul.bf16.vlgmr.msrb.gmra.mxu1 %v2970_v62  ;;  %v2382_v45 = vor.u32 %v2675_v41, %v2379_v43  ;;  %v2299_v37 = vld [vmem:[#allocation8 + $0x250] sm:$0xf0]  ;;  %v2691_v39 = vld [vmem:[#allocation8 + $0x364] sm:$0xf] }
  0xc2   :  { %632 = vmatmul.bf16.vlgmr.msrb.gmra.mxu2 %v2968_v61  ;;  %646 = vmatmul.bf16.vlgmr.msrb.gmra.mxu3 %v2970_v62  ;;  %v2137_v61 = vld [vmem:[#allocation8 + $0x100] sm:$0xf]  ;;  %v2123_v62 = vld [vmem:[#allocation8 + $0xf0] sm:$0xf0]  ;;  %v2651_v43 = vld [vmem:[#allocation8 + $0x224] sm:$0xf] }
  0xc3   :  { %1470 = vmatpush.bf16.msra.mxu0 %v2058_v11  ;;  %1484 = vmatpush.bf16.msra.mxu1 %v2186_v48  ;;  %v2138_v1 = vor.u32 %v2617_v8, %v2137_v61  ;;  %v2126_v5 = vor.u32 %v2611_v7, %v2123_v62  ;;  %v2685_v11 = vld [vmem:[#allocation8 + $0x32c] sm:$0xf0]  ;;  %v2203_v48 = vld [vmem:[#allocation8 + $0x190] sm:$0xf0]  ;;  %v2587_v7 = vld [vmem:[#allocation8 + $0x24] sm:$0xf] }
  0xc4   :  { %1498 = vmatpush.bf16.msra.mxu2 %v2314_v52  ;;  %1512 = vmatpush.bf16.msra.mxu3 %v2442_v20  ;;  %v2410_v49 = vor.u32 %v2685_v11, %v2409_v44  ;;  %v2206_v50 = vor.u32 %v2631_v47, %v2203_v48  ;;  %v2043_v52 = vld [vmem:[#allocation8 + $0x50] sm:$0xf0]  ;;  %v2667_v8 = vld [vmem:[#allocation8 + $0x2a4] sm:$0xf] }
  0xc5   :  { %v2046_v54 = vor.u32 %v2591_v51, %v2043_v52  ;;  %v2027_v61 = vld [vmem:[#allocation8 + $0x30] sm:$0xf0]  ;;  %v2350_v9 = vor.u32 %v2667_v8, %v2347_v0  ;;  %v2619_v20 = vld [vmem:[#allocation8 + $0x124] sm:$0xf] }
  0xc6   :  { %v2030_v62 = vor.u32 %v2587_v7, %v2027_v61  ;;  %v2443_v40 = vld [vmem:[#allocation8 + $0x370] sm:$0xf0]  ;;  %v2687_v48 = vld [vmem:[#allocation8 + $0x344] sm:$0xf] }
  0xc7   :  { %1471 = vmatpush.bf16.msra.mxu0 %v2042_v55  ;;  %1485 = vmatpush.bf16.msra.mxu1 %v2170_v57  ;;  %v2363_v55 = vld [vmem:[#allocation8 + $0x2d0] sm:$0xf0]  ;;  %v2681_v57 = vld [vmem:[#allocation8 + $0x30c] sm:$0xf0]  ;;  %v2647_v52 = vld [vmem:[#allocation8 + $0x204] sm:$0xf] }
  0xc8   :  { %1499 = vmatpush.bf16.msra.mxu2 %v2298_v60  ;;  %1513 = vmatpush.bf16.msra.mxu3 %v2426_v32  ;;  %v2366_v46 = vor.u32 %v2671_v53, %v2363_v55  ;;  %v2394_v58 = vor.u32 %v2681_v57, %v2393_v56  ;;  %v2187_v60 = vld [vmem:[#allocation8 + $0x170] sm:$0xf0]  ;;  %v2683_v56 = vld [vmem:[#allocation8 + $0x324] sm:$0xf] }
  0xc9   :  { %v2190_v3 = vor.u32 %v2627_v59, %v2187_v60  ;;  %v2283_v44 = vld [vmem:[#allocation8 + $0x230] sm:$0xf0] }
  0xca   :  { %v2267_v53 = vld [vmem:[#allocation8 + $0x210] sm:$0xf0] }
  0xcb   :  { %1472 = vmatpush.bf16.msra.mxu0 %v2026_v63  ;;  %1486 = vmatpush.bf16.msra.mxu1 %v2154_v6  ;;  %v2707_v63 = vld [vmem:[#allocation8 + $0x3e4] sm:$0xf]  ;;  %v2411_v57 = vld [vmem:[#allocation8 + $0x330] sm:$0xf0] }
  0xcc   :  { %1500 = vmatpush.bf16.msra.mxu2 %v2282_v26  ;;  %1514 = vmatpush.bf16.msra.mxu3 %v2410_v49  ;;  %v2510_v6 = vor.u32 %v2707_v63, %v2507_v4  ;;  %v2659_v26 = vld [vmem:[#allocation8 + $0x264] sm:$0xf]  ;;  %v2427_v49 = vld [vmem:[#allocation8 + $0x350] sm:$0xf0] }
  0xcd   :  { %v2318_v28 = vor.u32 %v2659_v26, %v2315_v27  ;;  %v2430_v51 = vor.u32 %v2687_v48, %v2427_v49  ;;  %v2395_v8 = vld [vmem:[#allocation8 + $0x310] sm:$0xf0]  ;;  %v2113_v26 = vld [vmem:[#allocation8 + $0xc8] sm:$0xf]  ;;  %v2610_v27 = vld [vmem:[#allocation8 + $0xd4] sm:$0xf0] }
  0xce   :  { %v2241_v49 = vld [vmem:[#allocation8 + $0x1c8] sm:$0xf] }
  0xcf   :  { %1473 = vmatpush.bf16.msra.mxu0 %v2010_v2  ;;  %1487 = vmatpush.bf16.msra.mxu1 %v2138_v1  ;;  %v2623_v2 = vld [vmem:[#allocation8 + $0x144] sm:$0xf]  ;;  %v2171_v1 = vld [vmem:[#allocation8 + $0x150] sm:$0xf0] }
  0xd0   :  { %1501 = vmatpush.bf16.msra.mxu2 %v2266_v38  ;;  %1515 = vmatpush.bf16.msra.mxu3 %v2394_v58  ;;  %v2302_v38 = vor.u32 %v2655_v36, %v2299_v37  ;;  %v2414_v58 = vor.u32 %v2683_v56, %v2411_v57  ;;  %v2097_v37 = vld [vmem:[#allocation8 + $0xa8] sm:$0xf] }
  0xd1   :  { %v2225_v57 = vld [vmem:[#allocation8 + $0x1a8] sm:$0xf] }
  0xd3   :  { %1522 = vmatpush.bf16.msrb.mxu0 %v2126_v5  ;;  %1536 = vmatpush.bf16.msrb.mxu1 %v2254_v10  ;;  %v2703_v5 = vld [vmem:[#allocation8 + $0x3c4] sm:$0xf]  ;;  %v2174_v10 = vor.u32 %v2623_v2, %v2171_v1 }
  0xd4   :  { %1550 = vmatpush.bf16.msrb.mxu2 %v2382_v45  ;;  %1564 = vmatpush.bf16.msrb.mxu3 %v2510_v6  ;;  %v2494_v13 = vor.u32 %v2703_v5, %v2491_v12  ;;  %v2286_v45 = vor.u32 %v2651_v43, %v2283_v44  ;;  %v2679_v6 = vld [vmem:[#allocation8 + $0x304] sm:$0xf]  ;;  %v2614_v12 = vld [vmem:[#allocation8 + $0xf4] sm:$0xf0] }
  0xd7   :  { %1523 = vmatpush.bf16.msrb.mxu0 %v2110_v14  ;;  %1537 = vmatpush.bf16.msrb.mxu1 %v2238_v23  ;;  %v2583_v14 = vld [vmem:[#allocation8 + $0x4] sm:$0xf]  ;;  %v2158_v23 = vor.u32 %v2619_v20, %v2155_v21 }
  0xd8   :  { %1551 = vmatpush.bf16.msrb.mxu2 %v2366_v46  ;;  %1565 = vmatpush.bf16.msrb.mxu3 %v2494_v13 }
  0xdb   :  { %1524 = vmatpush.bf16.msrb.mxu0 %v2094_v17  ;;  %1538 = vmatpush.bf16.msrb.mxu1 %v2222_v35  ;;  %v2014_v17 = vor.u32 %v2583_v14, %v2011_v15  ;;  %v2980_v35 = vld [vmem:[#allocation7] sm:$0xf] }
  0xdc   :  { %1552 = vmatpush.bf16.msrb.mxu2 %v2350_v9  ;;  %1566 = vmatpush.bf16.msrb.mxu3 %v2478_v25  ;;  %v212_v41 = vperm.slane %v2980_v35, 0  ;;  %v213_v55 = vperm.slane %v2980_v35, 1  ;;  %v214_v5 = vperm.slane %v2980_v35, 2 }
  0xdf   :  { %1525 = vmatpush.bf16.msrb.mxu0 %v2078_v29  ;;  %1539 = vmatpush.bf16.msrb.mxu1 %v2206_v50  ;;  %v2615_v29 = vld [vmem:[#allocation8 + $0x104] sm:$0xf] }
  0xe0   :  { %1553 = vmatpush.bf16.msrb.mxu2 %v2334_v19  ;;  %v2142_v32 = vor.u32 %v2615_v29, %v2139_v30  ;;  %1567 = vmatpush.bf16.msrb.mxu3 %v2462_v34  ;;  %v215_v30 = vperm.slane %v2980_v35, 3  ;;  %v2646_v34 = vld [vmem:[#allocation8 + $0x1f4] sm:$0xf0] }
  0xe3   :  { %1526 = vmatpush.bf16.msrb.mxu0 %v2062_v42  ;;  %1540 = vmatpush.bf16.msrb.mxu1 %v2190_v3  ;;  %v2446_v42 = vor.u32 %v2691_v39, %v2443_v40 }
  0xe4   :  { %1554 = vmatpush.bf16.msrb.mxu2 %v2318_v28 }
  0xe5   :  { %1568 = vmatpush.bf16.msrb.mxu3 %v2446_v42 }
  0xe7   :  { %1527 = vmatpush.bf16.msrb.mxu0 %v2046_v54  ;;  %1541 = vmatpush.bf16.msrb.mxu1 %v2174_v10  ;;  %v2270_v54 = vor.u32 %v2647_v52, %v2267_v53  ;;  %v2129_v10 = vld [vmem:[#allocation8 + $0xe8] sm:$0xf]  ;;  %v2602_v53 = vld [vmem:[#allocation8 + $0x94] sm:$0xf0] }
  0xe8   :  { %1555 = vmatpush.bf16.msrb.mxu2 %v2302_v38  ;;  %v2606_v38 = vld [vmem:[#allocation8 + $0xb4] sm:$0xf0]  ;;  %v2081_v52 = vld [vmem:[#allocation8 + $0x88] sm:$0xf] }
  0xe9   :  { %1569 = vmatpush.bf16.msrb.mxu3 %v2430_v51  ;;  %v2098_v35 = vor.u32 %v2606_v38, %v2097_v37  ;;  %v2590_v37 = vld [vmem:[#allocation8 + $0x34] sm:$0xf0] }
  0xeb   :  { %1528 = vmatpush.bf16.msrb.mxu0 %v2030_v62  ;;  %1542 = vmatpush.bf16.msrb.mxu1 %v2158_v23  ;;  %v2398_v62 = vor.u32 %v2679_v6, %v2395_v8  ;;  %v2130_v23 = vor.u32 %v2614_v12, %v2129_v10  ;;  %v2598_v8 = vld [vmem:[#allocation8 + $0x74] sm:$0xf0]  ;;  %v2209_v10 = vld [vmem:[#allocation8 + $0x188] sm:$0xf] }
  0xec   :  { %1556 = vmatpush.bf16.msrb.mxu2 %v2286_v45  ;;  %v2258_v45 = vor.u32 %v2646_v34, %v2257_v33  ;;  %v2634_v12 = vld [vmem:[#allocation8 + $0x194] sm:$0xf0] }
  0xed   :  { %1570 = vmatpush.bf16.msrb.mxu3 %v2414_v58  ;;  %v2670_v33 = vld [vmem:[#allocation8 + $0x2b4] sm:$0xf0] }
  0xef   :  { %1529 = vmatpush.bf16.msrb.mxu0 %v2014_v17  ;;  %1543 = vmatpush.bf16.msrb.mxu1 %v2142_v32  ;;  %v2114_v32 = vor.u32 %v2610_v27, %v2113_v26  ;;  %v2630_v26 = vld [vmem:[#allocation8 + $0x174] sm:$0xf0]  ;;  %v2513_v27 = vld [vmem:[#allocation8 + $0x3e8] sm:$0xf] }
  0xf0   :  { %1557 = vmatpush.bf16.msrb.mxu2 %v2270_v54 }
  0xf1   :  { %1571 = vmatpush.bf16.msrb.mxu3 %v2398_v62 }
 0x12e   :  { %v549_v11 = vpop.f32.mrf.mxu0  ;;  %v563_v47 = vpop.f32.mrf.mxu1 }
 0x12f   :  { %v550_v50 = vadd.f32 %v549_v11, %v212_v41 }
 0x131   :  { %v564_v46 = vadd.f32 %v563_v47, %v550_v50  ;;  %v2642_v50 = vld [vmem:[#allocation8 + $0x1d4] sm:$0xf0] }
 0x132   :  { %v2242_v56 = vor.u32 %v2642_v50, %v2241_v49  ;;  %v2017_v49 = vld [vmem:[#allocation8 + $0x8] sm:$0xf]  ;;  %v2586_v50 = vld [vmem:[#allocation8 + $0x14] sm:$0xf0] }
 0x133   :  { %v660_v7 = vmul.f32 0.2, %v564_v46  ;;  %vm652_vm7 = vcmp.ge.f32.partialorder %v564_v46, 0.0 }
 0x135   :  { %v577_v59 = vpop.f32.mrf.mxu2  ;;  %v591_v60 = vpop.f32.mrf.mxu3  ;;  %v668_v2 = vsel %vm652_vm7, %v564_v46, %v660_v7  ;;  %v2638_v46 = vld [vmem:[#allocation8 + $0x1b4] sm:$0xf0] }
 0x136   :  { %v578_v63 = vadd.f32 %v577_v59, %v213_v55  ;;  %v551_v3 = vpop.f32.mrf.mxu0  ;;  %v565_v4 = vpop.f32.mrf.mxu1  ;;  %v676_v16 = vmul.f32 1.4142135, %v668_v2  ;;  %v2226_v7 = vor.u32 %v2638_v46, %v2225_v57  ;;  %v2622_v57 = vld [vmem:[#allocation8 + $0x134] sm:$0xf0]  ;;  %v2481_v46 = vld [vmem:[#allocation8 + $0x3a8] sm:$0xf] }
 0x137   :  { %v552_v61 = vadd.f32 %v551_v3, %v212_v41  ;;  %v2678_v3 = vld [vmem:[#allocation8 + $0x2f4] sm:$0xf0] }
 0x138   :  { %v592_v9 = vadd.f32 %v591_v60, %v578_v63  ;;  %v2082_v60 = vor.u32 %v2602_v53, %v2081_v52  ;;  %v2385_v63 = vld [vmem:[#allocation8 + $0x2e8] sm:$0xf]  ;;  %v2612_v53 = vld [vmem:[#allocation8 + $0xec] sm:$0xf] }
 0x139   :  { %v566_v0 = vadd.f32 %v565_v4, %v552_v61  ;;  %v2065_v61 = vld [vmem:[#allocation8 + $0x68] sm:$0xf] }
 0x13a   :  { %v661_v17 = vmul.f32 0.2, %v592_v9  ;;  %vm653_vm9 = vcmp.ge.f32.partialorder %v592_v9, 0.0 }
 0x13b   :  { %vm656_vm8 = vcmp.ge.f32.partialorder %v566_v0, 0.0  ;;  %v664_v1 = vmul.f32 0.2, %v566_v0 }
 0x13c   :  { %v669_v28 = vsel %vm653_vm9, %v592_v9, %v661_v17  ;;  %v2674_v17 = vld [vmem:[#allocation8 + $0x2d4] sm:$0xf0] }
 0x13d   :  { %v672_v13 = vsel %vm656_vm8, %v566_v0, %v664_v1  ;;  %v579_v14 = vpop.f32.mrf.mxu2  ;;  %v593_v15 = vpop.f32.mrf.mxu3  ;;  %v677_v39 = vmul.f32 1.4142135, %v669_v28  ;;  %v2710_v28 = vld [vmem:[#allocation8 + $0x3f4] sm:$0xf0] }
 0x13e   :  { %v680_v18 = vmul.f32 1.4142135, %v672_v13  ;;  %v580_v19 = vadd.f32 %v579_v14, %v213_v55  ;;  %v605_v20 = vpop.f32.mrf.mxu0  ;;  %v619_v21 = vpop.f32.mrf.mxu1 }
 0x13f   :  { %v606_v22 = vadd.f32 %v605_v20, %v214_v5 }
 0x140   :  { %v2985_v24 = vpack.c.bf16 %v680_v18, %v676_v16  ;;  %v594_v25 = vadd.f32 %v593_v15, %v580_v19  ;;  %v2066_v15 = vor.u32 %v2598_v8, %v2065_v61  ;;  %v2369_v16 = vld [vmem:[#allocation8 + $0x2c8] sm:$0xf]  ;;  %v2594_v19 = vld [vmem:[#allocation8 + $0x54] sm:$0xf0]  ;;  %v2115_v61 = vld [vmem:[#allocation8 + $0xd8] sm:$0xf0] }
 0x141   :  { %v620_v31 = vadd.f32 %v619_v21, %v606_v22  ;;  %v2049_v18 = vld [vmem:[#allocation8 + $0x48] sm:$0xf]  ;;  %v2210_v22 = vor.u32 %v2634_v12, %v2209_v10 }
 0x142   :  { %vm657_vm10 = vcmp.ge.f32.partialorder %v594_v25, 0.0  ;;  %v665_v29 = vmul.f32 0.2, %v594_v25  ;;  %1474 = vmatmul.bf16.vlgmr.msra.gmra.mxu0 %v2985_v24  ;;  %v2145_v8 = vld [vmem:[#allocation8 + $0x108] sm:$0xf] }
 0x143   :  { %1578 = vmatpush.bf16.msra.mxu0 %v2130_v23  ;;  %v662_v47 = vmul.f32 0.2, %v620_v31  ;;  %vm654_vm11 = vcmp.ge.f32.partialorder %v620_v31, 0.0  ;;  %v2193_v23 = vld [vmem:[#allocation8 + $0x168] sm:$0xf] }
 0x144   :  { %v673_v36 = vsel %vm657_vm10, %v594_v25, %v665_v29  ;;  %v2370_v25 = vor.u32 %v2674_v17, %v2369_v16  ;;  %v2194_v38 = vor.u32 %v2630_v26, %v2193_v23  ;;  %v2305_v12 = vld [vmem:[#allocation8 + $0x248] sm:$0xf]  ;;  %v2604_v17 = vld [vmem:[#allocation8 + $0xac] sm:$0xf] }
 0x145   :  { %v681_v40 = vmul.f32 1.4142135, %v673_v36  ;;  %v633_v41 = vpop.f32.mrf.mxu2  ;;  %v647_v42 = vpop.f32.mrf.mxu3  ;;  %v670_v58 = vsel %vm654_vm11, %v620_v31, %v662_v47  ;;  %v2033_v31 = vld [vmem:[#allocation8 + $0x28] sm:$0xf]  ;;  %v2640_v23 = vld [vmem:[#allocation8 + $0x1cc] sm:$0xf] }
 0x146   :  { %v634_v43 = vadd.f32 %v633_v41, %v215_v30  ;;  %v607_v44 = vpop.f32.mrf.mxu0  ;;  %v621_v51 = vpop.f32.mrf.mxu1  ;;  %v678_v62 = vmul.f32 1.4142135, %v670_v58  ;;  %v2034_v47 = vor.u32 %v2590_v37, %v2033_v31  ;;  %v2702_v58 = vld [vmem:[#allocation8 + $0x3b4] sm:$0xf0]  ;;  %v2083_v31 = vld [vmem:[#allocation8 + $0x98] sm:$0xf0] }
 0x147   :  { %v2989_v11 = vpack.c.bf16 %v681_v40, %v677_v39  ;;  %v608_v48 = vadd.f32 %v607_v44, %v214_v5  ;;  %1579 = vmatpush.bf16.msra.mxu0 %v2114_v32  ;;  %v2386_v5 = vor.u32 %v2678_v3, %v2385_v63  ;;  %v2353_v32 = vld [vmem:[#allocation8 + $0x2a8] sm:$0xf]  ;;  %v2514_v39 = vor.u32 %v2710_v28, %v2513_v27  ;;  %v2662_v3 = vld [vmem:[#allocation8 + $0x274] sm:$0xf0]  ;;  %v2636_v37 = vld [vmem:[#allocation8 + $0x1ac] sm:$0xf] }
 0x148   :  { %v648_v55 = vadd.f32 %v647_v42, %v634_v43  ;;  %v2177_v40 = vld [vmem:[#allocation8 + $0x148] sm:$0xf]  ;;  %v2354_v42 = vor.u32 %v2670_v33, %v2353_v32  ;;  %v2626_v43 = vld [vmem:[#allocation8 + $0x154] sm:$0xf0] }
 0x149   :  { %v622_v54 = vadd.f32 %v621_v51, %v608_v48  ;;  %1488 = vmatmul.bf16.vlgmr.msra.gmra.mxu1 %v2989_v11  ;;  %v2497_v44 = vld [vmem:[#allocation8 + $0x3c8] sm:$0xf]  ;;  %v2178_v51 = vor.u32 %v2626_v43, %v2177_v40  ;;  %v2654_v28 = vld [vmem:[#allocation8 + $0x234] sm:$0xf0]  ;;  %v2596_v43 = vld [vmem:[#allocation8 + $0x6c] sm:$0xf] }
 0x14a   :  { %1592 = vmatpush.bf16.msra.mxu1 %v2258_v45  ;;  %v663_v0 = vmul.f32 0.2, %v648_v55  ;;  %vm655_vm13 = vcmp.ge.f32.partialorder %v648_v55, 0.0  ;;  %v2706_v45 = vld [vmem:[#allocation8 + $0x3d4] sm:$0xf0] }
 0x14b   :  { %vm658_vm12 = vcmp.ge.f32.partialorder %v622_v54, 0.0  ;;  %v666_v59 = vmul.f32 0.2, %v622_v54  ;;  %1580 = vmatpush.bf16.msra.mxu0 %v2098_v35  ;;  %v2337_v48 = vld [vmem:[#allocation8 + $0x288] sm:$0xf]  ;;  %v2498_v52 = vor.u32 %v2706_v45, %v2497_v44 }
 0x14c   :  { %v671_v20 = vsel %vm655_vm13, %v648_v55, %v663_v0  ;;  %v2666_v35 = vld [vmem:[#allocation8 + $0x294] sm:$0xf0]  ;;  %v2161_v55 = vld [vmem:[#allocation8 + $0x128] sm:$0xf]  ;;  %v2067_v45 = vld [vmem:[#allocation8 + $0x78] sm:$0xf0] }
 0x14d   :  { %v674_v4 = vsel %vm658_vm12, %v622_v54, %v666_v59  ;;  %v635_v6 = vpop.f32.mrf.mxu2  ;;  %v649_v1 = vpop.f32.mrf.mxu3  ;;  %v679_v34 = vmul.f32 1.4142135, %v671_v20  ;;  %v2131_v54 = vld [vmem:[#allocation8 + $0xf8] sm:$0xf0]  ;;  %v2018_v59 = vor.u32 %v2586_v50, %v2017_v49  ;;  %v2321_v63 = vld [vmem:[#allocation8 + $0x268] sm:$0xf] }
 0x14e   :  { %v682_v9 = vmul.f32 1.4142135, %v674_v4  ;;  %v636_v2 = vadd.f32 %v635_v6, %v215_v30  ;;  %1593 = vmatpush.bf16.msra.mxu1 %v2242_v56  ;;  %v2050_v30 = vor.u32 %v2594_v19, %v2049_v18  ;;  %v2338_v56 = vor.u32 %v2666_v35, %v2337_v48  ;;  %v2465_v0 = vld [vmem:[#allocation8 + $0x388] sm:$0xf]  ;;  %v2099_v18 = vld [vmem:[#allocation8 + $0xb8] sm:$0xf0] }
 0x14f   :  { %1581 = vmatpush.bf16.msra.mxu0 %v2082_v60  ;;  %v2134_v60 = vor.u32 %v2612_v53, %v2131_v54  ;;  %v2162_v4 = vor.u32 %v2622_v57, %v2161_v55  ;;  %v2482_v6 = vor.u32 %v2702_v58, %v2481_v46  ;;  %v2449_v20 = vld [vmem:[#allocation8 + $0x368] sm:$0xf]  ;;  %v2102_v26 = vor.u32 %v2604_v17, %v2099_v18  ;;  %v2387_v48 = vld [vmem:[#allocation8 + $0x2f8] sm:$0xf0]  ;;  %v2686_v50 = vld [vmem:[#allocation8 + $0x334] sm:$0xf0] }
 0x150   :  { %v2992_v13 = vpack.c.bf16 %v682_v9, %v678_v62  ;;  %v650_v14 = vadd.f32 %v649_v1, %v636_v2  ;;  %v2618_v62 = vld [vmem:[#allocation8 + $0x114] sm:$0xf0]  ;;  %v2322_v2 = vor.u32 %v2662_v3, %v2321_v63  ;;  %v2644_v1 = vld [vmem:[#allocation8 + $0x1ec] sm:$0xf]  ;;  %v2289_v27 = vld [vmem:[#allocation8 + $0x228] sm:$0xf]  ;;  %v2070_v54 = vor.u32 %v2596_v43, %v2067_v45 }
 0x151   :  { %v2698_v9 = vld [vmem:[#allocation8 + $0x394] sm:$0xf0]  ;;  %v2433_v33 = vld [vmem:[#allocation8 + $0x348] sm:$0xf]  ;;  %v2211_v53 = vld [vmem:[#allocation8 + $0x198] sm:$0xf0] }
 0x152   :  { %vm659_vm14 = vcmp.ge.f32.partialorder %v650_v14, 0.0  ;;  %v667_v21 = vmul.f32 0.2, %v650_v14  ;;  %1594 = vmatpush.bf16.msra.mxu1 %v2226_v7  ;;  %1502 = vmatmul.bf16.vlgmr.msra.gmra.mxu2 %v2992_v13  ;;  %v2608_v7 = vld [vmem:[#allocation8 + $0xcc] sm:$0xf]  ;;  %v2466_v16 = vor.u32 %v2698_v9, %v2465_v0 }
 0x153   :  { %1530 = vmatmul.bf16.vlgmr.msrb.gmra.mxu0 %v2985_v24  ;;  %1606 = vmatpush.bf16.msra.mxu2 %v2386_v5  ;;  %v2259_v5 = vld [vmem:[#allocation8 + $0x1f8] sm:$0xf0]  ;;  %v2118_v10 = vor.u32 %v2608_v7, %v2115_v61  ;;  %v2273_v40 = vld [vmem:[#allocation8 + $0x208] sm:$0xf]  ;;  %v2672_v58 = vld [vmem:[#allocation8 + $0x2cc] sm:$0xf] }
 0x154   :  { %v675_v29 = vsel %vm659_vm14, %v650_v14, %v667_v21  ;;  %1582 = vmatpush.bf16.msra.mxu0 %v2066_v15  ;;  %v2658_v14 = vld [vmem:[#allocation8 + $0x254] sm:$0xf0]  ;;  %v2146_v15 = vor.u32 %v2618_v62, %v2145_v8  ;;  %v2262_v19 = vor.u32 %v2644_v1, %v2259_v5  ;;  %v2417_v49 = vld [vmem:[#allocation8 + $0x328] sm:$0xf]  ;;  %v2051_v46 = vld [vmem:[#allocation8 + $0x58] sm:$0xf0] }
 0x155   :  { %v683_v36 = vmul.f32 1.4142135, %v675_v29  ;;  %v2694_v21 = vld [vmem:[#allocation8 + $0x374] sm:$0xf0]  ;;  %v2418_v57 = vor.u32 %v2686_v50, %v2417_v49  ;;  %v2401_v63 = vld [vmem:[#allocation8 + $0x308] sm:$0xf] }
 0x156   :  { %1595 = vmatpush.bf16.msra.mxu1 %v2210_v22  ;;  %v2306_v22 = vor.u32 %v2658_v14, %v2305_v12  ;;  %v2450_v29 = vor.u32 %v2694_v21, %v2449_v20  ;;  %v2682_v3 = vld [vmem:[#allocation8 + $0x314] sm:$0xf0]  ;;  %v2708_v7 = vld [vmem:[#allocation8 + $0x3ec] sm:$0xf]  ;;  %v2515_v61 = vld [vmem:[#allocation8 + $0x3f8] sm:$0xf0] }
 0x157   :  { %v2996_v41 = vpack.c.bf16 %v683_v36, %v679_v34  ;;  %1607 = vmatpush.bf16.msra.mxu2 %v2370_v25  ;;  %v2243_v25 = vld [vmem:[#allocation8 + $0x1d8] sm:$0xf0]  ;;  %v2690_v34 = vld [vmem:[#allocation8 + $0x354] sm:$0xf0]  ;;  %v2290_v36 = vor.u32 %v2654_v28, %v2289_v27  ;;  %v2588_v0 = vld [vmem:[#allocation8 + $0x2c] sm:$0xf]  ;;  %v2402_v9 = vor.u32 %v2682_v3, %v2401_v63  ;;  %v2518_v12 = vor.u32 %v2708_v7, %v2515_v61 }
 0x158   :  { %1583 = vmatpush.bf16.msra.mxu0 %v2050_v30  ;;  %v2600_v30 = vld [vmem:[#allocation8 + $0x8c] sm:$0xf]  ;;  %v2246_v32 = vor.u32 %v2640_v23, %v2243_v25  ;;  %v2434_v44 = vor.u32 %v2690_v34, %v2433_v33  ;;  %v2355_v5 = vld [vmem:[#allocation8 + $0x2b8] sm:$0xf0]  ;;  %v3010_v61 = vld [vmem:[#allocation10] sm:$0xf] }
 0x159   :  { %1516 = vmatmul.bf16.vlgmr.msra.gmra.mxu3 %v2996_v41  ;;  %1544 = vmatmul.bf16.vlgmr.msrb.gmra.mxu1 %v2989_v11  ;;  %v2668_v1 = vld [vmem:[#allocation8 + $0x2ac] sm:$0xf]  ;;  %v2499_v17 = vld [vmem:[#allocation8 + $0x3d8] sm:$0xf0] }
 0x15a   :  { %1596 = vmatpush.bf16.msra.mxu1 %v2194_v38  ;;  %1620 = vmatpush.bf16.msra.mxu3 %v2514_v39  ;;  %v2227_v38 = vld [vmem:[#allocation8 + $0x1b8] sm:$0xf0]  ;;  %v2086_v39 = vor.u32 %v2600_v30, %v2083_v31  ;;  %v2624_v14 = vld [vmem:[#allocation8 + $0x14c] sm:$0xf] }
 0x15b   :  { %1608 = vmatpush.bf16.msra.mxu2 %v2354_v42  ;;  %v2650_v42 = vld [vmem:[#allocation8 + $0x214] sm:$0xf0]  ;;  %v2230_v35 = vor.u32 %v2636_v37, %v2227_v38  ;;  %v2584_v20 = vld [vmem:[#allocation8 + $0xc] sm:$0xf]  ;;  %v2019_v21 = vld [vmem:[#allocation8 + $0x18] sm:$0xf0] }
 0x15c   :  { %1584 = vmatpush.bf16.msra.mxu0 %v2034_v47  ;;  %v2676_v47 = vld [vmem:[#allocation8 + $0x2ec] sm:$0xf]  ;;  %v2339_v23 = vld [vmem:[#allocation8 + $0x298] sm:$0xf0]  ;;  %v2022_v31 = vor.u32 %v2584_v20, %v2019_v21  ;;  %v819_v20 = vperm.slane %v3010_v61, 1 }
 0x15d   :  { %v2390_v55 = vor.u32 %v2676_v47, %v2387_v48  ;;  %v2620_v27 = vld [vmem:[#allocation8 + $0x12c] sm:$0xf]  ;;  %v2163_v28 = vld [vmem:[#allocation8 + $0x138] sm:$0xf0] }
 0x15e   :  { %1597 = vmatpush.bf16.msra.mxu1 %v2178_v51  ;;  %1621 = vmatpush.bf16.msra.mxu3 %v2498_v52  ;;  %v2274_v51 = vor.u32 %v2650_v42, %v2273_v40  ;;  %v2632_v52 = vld [vmem:[#allocation8 + $0x18c] sm:$0xf]  ;;  %v2483_v30 = vld [vmem:[#allocation8 + $0x3b8] sm:$0xf0] }
 0x15f   :  { %1609 = vmatpush.bf16.msra.mxu2 %v2338_v56  ;;  %v2592_v56 = vld [vmem:[#allocation8 + $0x4c] sm:$0xf]  ;;  %v2323_v34 = vld [vmem:[#allocation8 + $0x278] sm:$0xf0] }
 0x160   :  { %1585 = vmatpush.bf16.msra.mxu0 %v2018_v59  ;;  %v2371_v59 = vld [vmem:[#allocation8 + $0x2d8] sm:$0xf0]  ;;  %v2054_v8 = vor.u32 %v2592_v56, %v2051_v46  ;;  %v2660_v33 = vld [vmem:[#allocation8 + $0x26c] sm:$0xf] }
 0x161   :  { %v2374_v62 = vor.u32 %v2672_v58, %v2371_v59  ;;  %v2616_v38 = vld [vmem:[#allocation8 + $0x10c] sm:$0xf]  ;;  %v2467_v42 = vld [vmem:[#allocation8 + $0x398] sm:$0xf0]  ;;  %v2326_v43 = vor.u32 %v2660_v33, %v2323_v34 }
 0x162   :  { %1598 = vmatpush.bf16.msra.mxu1 %v2162_v4  ;;  %1622 = vmatpush.bf16.msra.mxu3 %v2482_v6  ;;  %v2628_v4 = vld [vmem:[#allocation8 + $0x16c] sm:$0xf]  ;;  %v2195_v6 = vld [vmem:[#allocation8 + $0x178] sm:$0xf0] }
 0x163   :  { %1558 = vmatmul.bf16.vlgmr.msrb.gmra.mxu2 %v2992_v13  ;;  %1586 = vmatmul.bf16.vlgmr.msra.gmra.mxu0 %v2985_v24  ;;  %v2696_v40 = vld [vmem:[#allocation8 + $0x38c] sm:$0xf]  ;;  %v2307_v45 = vld [vmem:[#allocation8 + $0x258] sm:$0xf0] }
 0x164   :  { %1634 = vmatpush.bf16.msrb.mxu0 %v2134_v60  ;;  %1610 = vmatpush.bf16.msra.mxu2 %v2322_v2  ;;  %v2214_v60 = vor.u32 %v2632_v52, %v2211_v53  ;;  %v2035_v2 = vld [vmem:[#allocation8 + $0x38] sm:$0xf0]  ;;  %v2470_v48 = vor.u32 %v2696_v40, %v2467_v42  ;;  %v2680_v3 = vld [vmem:[#allocation8 + $0x30c] sm:$0xf] }
 0x165   :  { %v2038_v18 = vor.u32 %v2588_v0, %v2035_v2  ;;  %v2451_v49 = vld [vmem:[#allocation8 + $0x378] sm:$0xf0] }
 0x166   :  { %1599 = vmatpush.bf16.msra.mxu1 %v2146_v15  ;;  %1623 = vmatpush.bf16.msra.mxu3 %v2466_v16  ;;  %v2179_v15 = vld [vmem:[#allocation8 + $0x158] sm:$0xf0]  ;;  %v2704_v16 = vld [vmem:[#allocation8 + $0x3cc] sm:$0xf] }
 0x167   :  { %v2182_v25 = vor.u32 %v2624_v14, %v2179_v15  ;;  %v2291_v52 = vld [vmem:[#allocation8 + $0x238] sm:$0xf0] }
 0x168   :  { %1635 = vmatpush.bf16.msrb.mxu0 %v2118_v10  ;;  %1611 = vmatpush.bf16.msra.mxu2 %v2306_v22  ;;  %v2198_v10 = vor.u32 %v2628_v4, %v2195_v6  ;;  %v2664_v22 = vld [vmem:[#allocation8 + $0x28c] sm:$0xf]  ;;  %v2275_v46 = vld [vmem:[#allocation8 + $0x218] sm:$0xf0] }
 0x169   :  { %1572 = vmatmul.bf16.vlgmr.msrb.gmra.mxu3 %v2996_v41  ;;  %1600 = vmatmul.bf16.vlgmr.msra.gmra.mxu1 %v2989_v11  ;;  %v2419_v59 = vld [vmem:[#allocation8 + $0x338] sm:$0xf0] }
 0x16a   :  { %1648 = vmatpush.bf16.msrb.mxu1 %v2262_v19  ;;  %1624 = vmatpush.bf16.msra.mxu3 %v2450_v29  ;;  %v2358_v19 = vor.u32 %v2668_v1, %v2355_v5  ;;  %v2700_v29 = vld [vmem:[#allocation8 + $0x3ac] sm:$0xf]  ;;  %v2403_v4 = vld [vmem:[#allocation8 + $0x318] sm:$0xf0] }
 0x16b   :  { %v2486_v37 = vor.u32 %v2700_v29, %v2483_v30  ;;  %v2406_v6 = vor.u32 %v2680_v3, %v2403_v4 }
 0x16c   :  { %1636 = vmatpush.bf16.msrb.mxu0 %v2102_v26  ;;  %1612 = vmatpush.bf16.msra.mxu2 %v2290_v36  ;;  %v2502_v26 = vor.u32 %v2704_v16, %v2499_v17  ;;  %v2166_v36 = vor.u32 %v2620_v27, %v2163_v28 }
 0x16e   :  { %1649 = vmatpush.bf16.msrb.mxu1 %v2246_v32  ;;  %1625 = vmatpush.bf16.msra.mxu3 %v2434_v44  ;;  %v2342_v32 = vor.u32 %v2664_v22, %v2339_v23  ;;  %v2656_v44 = vld [vmem:[#allocation8 + $0x24c] sm:$0xf] }
 0x16f   :  { %v2310_v50 = vor.u32 %v2656_v44, %v2307_v45 }
 0x170   :  { %1637 = vmatpush.bf16.msrb.mxu0 %v2086_v39  ;;  %1613 = vmatpush.bf16.msra.mxu2 %v2274_v51  ;;  %v2147_v39 = vld [vmem:[#allocation8 + $0x118] sm:$0xf0]  ;;  %v2652_v51 = vld [vmem:[#allocation8 + $0x22c] sm:$0xf] }
 0x171   :  { %v2150_v47 = vor.u32 %v2616_v38, %v2147_v39  ;;  %v2294_v56 = vor.u32 %v2652_v51, %v2291_v52 }
 0x172   :  { %1650 = vmatpush.bf16.msrb.mxu1 %v2230_v35  ;;  %1626 = vmatpush.bf16.msra.mxu3 %v2418_v57  ;;  %v2692_v35 = vld [vmem:[#allocation8 + $0x36c] sm:$0xf] }
 0x173   :  { %1614 = vmatmul.bf16.vlgmr.msra.gmra.mxu2 %v2992_v13  ;;  %v2454_v53 = vor.u32 %v2692_v35, %v2451_v49  ;;  %v2648_v57 = vld [vmem:[#allocation8 + $0x20c] sm:$0xf] }
 0x174   :  { %1638 = vmatpush.bf16.msrb.mxu0 %v2070_v54  ;;  %1662 = vmatpush.bf16.msrb.mxu2 %v2390_v55  ;;  %v2688_v54 = vld [vmem:[#allocation8 + $0x34c] sm:$0xf]  ;;  %v2435_v55 = vld [vmem:[#allocation8 + $0x358] sm:$0xf0] }
 0x175   :  { %v2438_v58 = vor.u32 %v2688_v54, %v2435_v55 }
 0x176   :  { %1651 = vmatpush.bf16.msrb.mxu1 %v2214_v60  ;;  %1627 = vmatpush.bf16.msra.mxu3 %v2402_v9  ;;  %v2278_v60 = vor.u32 %v2648_v57, %v2275_v46 }
 0x178   :  { %1639 = vmatpush.bf16.msrb.mxu0 %v2054_v8  ;;  %1663 = vmatpush.bf16.msrb.mxu2 %v2374_v62  ;;  %v818_v8 = vperm.slane %v3010_v61, 0 }
 0x179   :  { %1628 = vmatmul.bf16.vlgmr.msra.gmra.mxu3 %v2996_v41 }
 0x17a   :  { %1652 = vmatpush.bf16.msrb.mxu1 %v2198_v10  ;;  %1676 = vmatpush.bf16.msrb.mxu3 %v2518_v12 }
 0x17c   :  { %1640 = vmatpush.bf16.msrb.mxu0 %v2038_v18  ;;  %1664 = vmatpush.bf16.msrb.mxu2 %v2358_v19 }
 0x17e   :  { %1653 = vmatpush.bf16.msrb.mxu1 %v2182_v25  ;;  %1677 = vmatpush.bf16.msrb.mxu3 %v2502_v26 }
 0x180   :  { %1641 = vmatpush.bf16.msrb.mxu0 %v2022_v31  ;;  %1665 = vmatpush.bf16.msrb.mxu2 %v2342_v32 }
 0x182   :  { %1654 = vmatpush.bf16.msrb.mxu1 %v2166_v36  ;;  %1678 = vmatpush.bf16.msrb.mxu3 %v2486_v37 }
 0x183   :  { %1642 = vmatmul.bf16.vlgmr.msrb.gmra.mxu0 %v2985_v24  ;;  %v2684_v24 = vld [vmem:[#allocation8 + $0x32c] sm:$0xf] }
 0x184   :  { %1666 = vmatpush.bf16.msrb.mxu2 %v2326_v43  ;;  %v2422_v63 = vor.u32 %v2684_v24, %v2419_v59 }
 0x186   :  { %1655 = vmatpush.bf16.msrb.mxu1 %v2150_v47  ;;  %1679 = vmatpush.bf16.msrb.mxu3 %v2470_v48  ;;  %v820_v47 = vperm.slane %v3010_v61, 2 }
 0x188   :  { %1667 = vmatpush.bf16.msrb.mxu2 %v2310_v50 }
 0x189   :  { %1656 = vmatmul.bf16.vlgmr.msrb.gmra.mxu1 %v2989_v11 }
 0x18a   :  { %1680 = vmatpush.bf16.msrb.mxu3 %v2454_v53 }
 0x18c   :  { %1668 = vmatpush.bf16.msrb.mxu2 %v2294_v56 }
 0x18e   :  { %1681 = vmatpush.bf16.msrb.mxu3 %v2438_v58 }
 0x190   :  { %1669 = vmatpush.bf16.msrb.mxu2 %v2278_v60 }
 0x192   :  { %1682 = vmatpush.bf16.msrb.mxu3 %v2422_v63 }
 0x193   :  { %1670 = vmatmul.bf16.vlgmr.msrb.gmra.mxu2 %v2992_v13 }
 0x196   :  { %1683 = vmatpush.bf16.msrb.mxu3 %v2406_v6 }
 0x199   :  { %1684 = vmatmul.bf16.vlgmr.msrb.gmra.mxu3 %v2996_v41 }
 0x1bf   :  { %v1475_v11 = vpop.f32.mrf.mxu0 }
 0x1c0   :  { %v1476_v9 = vadd.f32 %v1475_v11, %v818_v8 }
 0x1c6   :  { %v1489_v7 = vpop.f32.mrf.mxu1 }
 0x1c7   :  { %v1477_v62 = vpop.f32.mrf.mxu0  ;;  %v1490_v1 = vadd.f32 %v1489_v7, %v1476_v9 }
 0x1c8   :  { %v1478_v15 = vadd.f32 %v1477_v62, %v818_v8 }
 0x1ce   :  { %v1491_v2 = vpop.f32.mrf.mxu1 }
 0x1cf   :  { %v1492_v41 = vadd.f32 %v1491_v2, %v1478_v15 }
 0x1d0   :  { %v1531_v13 = vpop.f32.mrf.mxu0 }
 0x1d1   :  { %v1532_v26 = vadd.f32 %v1531_v13, %v819_v20 }
 0x1d5   :  { %v1503_v0 = vpop.f32.mrf.mxu2 }
 0x1d6   :  { %v1504_v5 = vadd.f32 %v1503_v0, %v1490_v1  ;;  %v1545_v17 = vpop.f32.mrf.mxu1  ;;  %v821_v1 = vperm.slane %v3010_v61, 3 }
 0x1d7   :  { %v1546_v28 = vadd.f32 %v1545_v17, %v1532_v26 }
 0x1d8   :  { %v1533_v29 = vpop.f32.mrf.mxu0 }
 0x1d9   :  { %v1534_v38 = vadd.f32 %v1533_v29, %v819_v20 }
 0x1dc   :  { %v1517_v10 = vpop.f32.mrf.mxu3 }
 0x1dd   :  { %v1518_v12 = vadd.f32 %v1517_v10, %v1504_v5  ;;  %v1505_v14 = vpop.f32.mrf.mxu2 }
 0x1de   :  { %v1506_v21 = vadd.f32 %v1505_v14, %v1492_v41  ;;  %v1547_v32 = vpop.f32.mrf.mxu1 }
 0x1df   :  { %vm1690_vm15 = vcmp.ge.f32.partialorder %v1518_v12, 0.0  ;;  %v1698_v16 = vmul.f32 0.2, %v1518_v12  ;;  %v1548_v40 = vadd.f32 %v1547_v32, %v1534_v38 }
 0x1e0   :  { %v1587_v44 = vpop.f32.mrf.mxu0 }
 0x1e1   :  { %v1706_v18 = vsel %vm1690_vm15, %v1518_v12, %v1698_v16  ;;  %v1588_v52 = vadd.f32 %v1587_v44, %v820_v47 }
 0x1e2   :  { %v1714_v19 = vmul.f32 1.4142135, %v1706_v18 }
 0x1e4   :  { %1722 = vst [vmem:[#allocation11] sm:$0xff] %v1714_v19  ;;  %v1519_v22 = vpop.f32.mrf.mxu3 }
 0x1e5   :  { %v1520_v23 = vadd.f32 %v1519_v22, %v1506_v21 }
 0x1e6   :  { %v1559_v25 = vpop.f32.mrf.mxu2  ;;  %v1601_v35 = vpop.f32.mrf.mxu1 }
 0x1e7   :  { %vm1694_vm0 = vcmp.ge.f32.partialorder %v1520_v23, 0.0  ;;  %v1702_v27 = vmul.f32 0.2, %v1520_v23  ;;  %v1560_v33 = vadd.f32 %v1559_v25, %v1546_v28  ;;  %v1602_v54 = vadd.f32 %v1601_v35, %v1588_v52 }
 0x1e8   :  { %v1589_v57 = vpop.f32.mrf.mxu0 }
 0x1e9   :  { %v1710_v30 = vsel %vm1694_vm0, %v1520_v23, %v1702_v27  ;;  %v1590_v59 = vadd.f32 %v1589_v57, %v820_v47 }
 0x1ea   :  { %v1718_v31 = vmul.f32 1.4142135, %v1710_v30 }
 0x1ec   :  { %1726 = vst [vmem:[#allocation11 + $0x20] sm:$0xff] %v1718_v31  ;;  %v1573_v34 = vpop.f32.mrf.mxu3 }
 0x1ed   :  { %v1574_v36 = vadd.f32 %v1573_v34, %v1560_v33 }
 0x1ee   :  { %v1561_v37 = vpop.f32.mrf.mxu2  ;;  %v1603_v24 = vpop.f32.mrf.mxu1 }
 0x1ef   :  { %vm1691_vm1 = vcmp.ge.f32.partialorder %v1574_v36, 0.0  ;;  %v1699_v39 = vmul.f32 0.2, %v1574_v36  ;;  %v1562_v45 = vadd.f32 %v1561_v37, %v1548_v40  ;;  %v1604_v3 = vadd.f32 %v1603_v24, %v1590_v59 }
 0x1f1   :  { %v1707_v42 = vsel %vm1691_vm1, %v1574_v36, %v1699_v39 }
 0x1f2   :  { %v1715_v43 = vmul.f32 1.4142135, %v1707_v42 }
 0x1f4   :  { %1723 = vst [vmem:[#allocation11 + $0x8] sm:$0xff] %v1715_v43  ;;  %v1575_v48 = vpop.f32.mrf.mxu3 }
 0x1f5   :  { %v1576_v49 = vadd.f32 %v1575_v48, %v1562_v45 }
 0x1f6   :  { %v1615_v51 = vpop.f32.mrf.mxu2 }
 0x1f7   :  { %vm1695_vm2 = vcmp.ge.f32.partialorder %v1576_v49, 0.0  ;;  %v1703_v50 = vmul.f32 0.2, %v1576_v49  ;;  %v1616_v56 = vadd.f32 %v1615_v51, %v1602_v54 }
 0x1f9   :  { %v1711_v53 = vsel %vm1695_vm2, %v1576_v49, %v1703_v50 }
 0x1fa   :  { %v1719_v55 = vmul.f32 1.4142135, %v1711_v53 }
 0x1fc   :  { %1727 = vst [vmem:[#allocation11 + $0x28] sm:$0xff] %v1719_v55  ;;  %v1629_v46 = vpop.f32.mrf.mxu3 }
 0x1fd   :  { %v1630_v58 = vadd.f32 %v1629_v46, %v1616_v56 }
 0x1fe   :  { %v1617_v63 = vpop.f32.mrf.mxu2 }
 0x1ff   :  { %vm1692_vm3 = vcmp.ge.f32.partialorder %v1630_v58, 0.0  ;;  %v1700_v60 = vmul.f32 0.2, %v1630_v58  ;;  %v1618_v11 = vadd.f32 %v1617_v63, %v1604_v3 }
 0x200   :  { %v1643_v2 = vpop.f32.mrf.mxu0 }
 0x201   :  { %v1708_v4 = vsel %vm1692_vm3, %v1630_v58, %v1700_v60  ;;  %v1644_v12 = vadd.f32 %v1643_v2, %v821_v1 }
 0x202   :  { %v1716_v6 = vmul.f32 1.4142135, %v1708_v4 }
 0x204   :  { %1724 = vst [vmem:[#allocation11 + $0x10] sm:$0xff] %v1716_v6  ;;  %v1631_v7 = vpop.f32.mrf.mxu3 }
 0x205   :  { %v1632_v8 = vadd.f32 %v1631_v7, %v1618_v11 }
 0x206   :  { %v1657_v5 = vpop.f32.mrf.mxu1 }
 0x207   :  { %vm1696_vm4 = vcmp.ge.f32.partialorder %v1632_v8, 0.0  ;;  %v1704_v62 = vmul.f32 0.2, %v1632_v8  ;;  %v1658_v14 = vadd.f32 %v1657_v5, %v1644_v12 }
 0x208   :  { %v1645_v13 = vpop.f32.mrf.mxu0 }
 0x209   :  { %v1712_v0 = vsel %vm1696_vm4, %v1632_v8, %v1704_v62  ;;  %v1646_v18 = vadd.f32 %v1645_v13, %v821_v1 }
 0x20a   :  { %v1720_v9 = vmul.f32 1.4142135, %v1712_v0 }
 0x20c   :  { %1728 = vst [vmem:[#allocation11 + $0x30] sm:$0xff] %v1720_v9 }
 0x20e   :  { %v1659_v17 = vpop.f32.mrf.mxu1 }
 0x20f   :  { %v1660_v21 = vadd.f32 %v1659_v17, %v1646_v18 }
 0x216   :  { %v1671_v10 = vpop.f32.mrf.mxu2 }
 0x217   :  { %v1672_v15 = vadd.f32 %v1671_v10, %v1658_v14 }
 0x21c   :  { %v1685_v16 = vpop.f32.mrf.mxu3 }
 0x21d   :  { %v1686_v41 = vadd.f32 %v1685_v16, %v1672_v15 }
 0x21e   :  { %v1673_v20 = vpop.f32.mrf.mxu2 }
 0x21f   :  { %vm1693_vm5 = vcmp.ge.f32.partialorder %v1686_v41, 0.0  ;;  %v1701_v19 = vmul.f32 0.2, %v1686_v41  ;;  %v1674_v25 = vadd.f32 %v1673_v20, %v1660_v21 }
 0x221   :  { %v1709_v22 = vsel %vm1693_vm5, %v1686_v41, %v1701_v19 }
 0x222   :  { %v1717_v23 = vmul.f32 1.4142135, %v1709_v22 }
 0x224   :  { %1725 = vst [vmem:[#allocation11 + $0x18] sm:$0xff] %v1717_v23  ;;  %v1687_v26 = vpop.f32.mrf.mxu3 }
 0x225   :  { %v1688_v61 = vadd.f32 %v1687_v26, %v1674_v25 }
 0x227   :  { %vm1697_vm6 = vcmp.ge.f32.partialorder %v1688_v61, 0.0  ;;  %v1705_v27 = vmul.f32 0.2, %v1688_v61 }
 0x229   :  { %v1713_v28 = vsel %vm1697_vm6, %v1688_v61, %v1705_v27 }
 0x22a   :  { %v1721_v29 = vmul.f32 1.4142135, %v1713_v28 }
 0x22c   :  { %1729 = vst [vmem:[#allocation11 + $0x38] sm:$0xff] %v1721_v29 }
 0x22d   :  { %1742 = dma.vmem_to_hbm [thread:$0]  %s1735_s4, 1024, %s1737_s19, [#allocation4], %s2889_s20, %s2889_s20, %s2890_s21  }
 0x22e   :  { %2878 = dma.done.wait [#allocation4], 1024  }
 0x22f   :  { %2879 = vsyncadd [#allocation4], 4294966272 }
 0x230   :  { %1747 = vsyncpa [#allocation3], 1 }
 0x231   :  { %1748 = vsyncpa [#allocation6], 1 }
 0x232   :  { %1749 = vsyncpa [#allocation9], 1 }
 0x233   :  { %1750 = vsyncpa [#allocation4], 1 }

</bundles_post_ra>
